<compile_context>
chip_gen: v6e
topology: v6e:2x2x1
jax: 0.10.0
libtpu: 0.0.40
codegen_flags: <defaults>
</compile_context>

<pallas_src>
import jax
import jax.numpy as jnp
from jax import lax
from jax.experimental import pallas as pl
from jax.experimental.pallas import tpu as pltpu

EPS = 1e-5  # InstanceNorm2d default eps


def _make_kernel(C, H, W):
    HW = H * W

    def kernel(x_ref, w1_ref, w2_ref, o_ref):
        x = x_ref[0]  # (C, HW) f32; loaded once, reused for the residual

        # Boundary masks over the flattened spatial (lane) axis.
        lane = lax.broadcasted_iota(jnp.int32, (C, HW), 1)
        top = lane < W            # row == 0
        bot = lane >= HW - W      # row == H-1
        if (W & (W - 1)) == 0:    # pow2 fast path for the column index
            col = lane & (W - 1)
        else:
            col = lane % W
        left = col == 0
        right = col == W - 1

        def build_taps(p):
            """The 9 reflect-padded 3x3 taps of p, each (C, HW); kh-major order."""
            # H-direction shifts: roll the flattened plane by +/-W lanes, then
            # fix the wrapped boundary row with its reflected value.
            p_next = pltpu.roll(p, HW - W, axis=1)    # (h,w) -> p[h+1, w] (wraps)
            p_prev = pltpu.roll(p, W, axis=1)         # (h,w) -> p[h-1, w] (wraps)
            r_m1 = jnp.where(top, p_next, p_prev)     # p[reflect(h-1), w]
            r_p1 = jnp.where(bot, p_prev, p_next)     # p[reflect(h+1), w]
            taps = []
            for r in (r_m1, p, r_p1):                 # kh = 0, 1, 2
                r_next = pltpu.roll(r, HW - 1, axis=1)    # (h,w) -> r at idx+1
                r_prev = pltpu.roll(r, 1, axis=1)         # (h,w) -> r at idx-1
                c_m1 = jnp.where(left, r_next, r_prev)    # r[h, reflect(w-1)]
                c_p1 = jnp.where(right, r_prev, r_next)   # r[h, reflect(w+1)]
                taps += [c_m1, r, c_p1]                   # kw = 0, 1, 2
            return taps

        def conv3x3_in(p, w):
            """reflect-pad(1) -> 3x3 conv (bias dropped) -> InstanceNorm."""
            taps = build_taps(p)          # hoisted: reused for every out chan
            y = jnp.zeros((C, HW), jnp.float32)
            for k in range(9):
                t = taps[k]
                for ci in range(C):
                    j = k * C + ci
                    # (C,1) weight column x (1,HW) tap row -> (C,HW) MAC (VPU)
                    y = y + w[:, j:j + 1] * t[ci:ci + 1, :]
            # InstanceNorm (affine=False): fused single-pass stats per channel.
            m = jnp.mean(y, axis=1, keepdims=True)          # (C, 1)
            ms = jnp.mean(y * y, axis=1, keepdims=True)
            return (y - m) * lax.rsqrt(ms - m * m + EPS)    # biased variance

        w1 = w1_ref[...]  # (C, 9*C)
        w2 = w2_ref[...]
        h1 = jnp.maximum(conv3x3_in(x, w1), 0.0)   # conv1 + IN + ReLU
        h2 = conv3x3_in(h1, w2)                    # conv2 + IN
        o_ref[0] = x + h2                          # residual, one dense store

    return kernel


def resnet_block(x, w1, b1, w2, b2):
    """x: (N,C,H,W) f32; w*: (C,C,3,3) f32 (OIHW, like PyTorch); b*: (C,) f32.

    Conv biases are accepted for API fidelity but unused: InstanceNorm2d
    (affine=False) subtracts the per-channel mean, so a constant per-channel
    bias cancels exactly.
    """
    del b1, b2
    N, C, H, W = x.shape
    HW = H * W
    xf = x.reshape(N, C, HW)  # lane-dense spatial slab
    # OIHW -> (C_out, 9*C_in), column index = (kh*3 + kw)*C + ci.
    wm1 = jnp.transpose(w1, (0, 2, 3, 1)).reshape(C, 9 * C)
    wm2 = jnp.transpose(w2, (0, 2, 3, 1)).reshape(C, 9 * C)

    out = pl.pallas_call(
        _make_kernel(C, H, W),
        out_shape=jax.ShapeDtypeStruct((N, C, HW), jnp.float32),
        grid=(N,),
        in_specs=[
            pl.BlockSpec((1, C, HW), lambda n: (n, 0, 0)),   # one image / step
            pl.BlockSpec((C, 9 * C), lambda n: (0, 0)),      # conv1 weights
            pl.BlockSpec((C, 9 * C), lambda n: (0, 0)),      # conv2 weights
        ],
        out_specs=pl.BlockSpec((1, C, HW), lambda n: (n, 0, 0)),
        compiler_params=pltpu.CompilerParams(
            dimension_semantics=("parallel",)),   # batch axis -> v7x megacore
    )(xf, wm1, wm2)
    return out.reshape(N, C, H, W)


def ref_resnet_block(x, w1, b1, w2, b2):
    """Pure-JAX reference mirroring the PyTorch forward."""
    def pad_reflect(t):
        return jnp.pad(t, ((0, 0), (0, 0), (1, 1), (1, 1)), mode="reflect")

    def conv(t, w, b):
        y = lax.conv_general_dilated(
            t, w, window_strides=(1, 1), padding="VALID",
            dimension_numbers=("NCHW", "OIHW", "NCHW"))
        return y + b.reshape(1, -1, 1, 1)

    def inorm(t):
        m = jnp.mean(t, axis=(2, 3), keepdims=True)
        v = jnp.mean((t - m) ** 2, axis=(2, 3), keepdims=True)
        return (t - m) * lax.rsqrt(v + EPS)

    h = jnp.maximum(inorm(conv(pad_reflect(x), w1, b1)), 0.0)
    h = inorm(conv(pad_reflect(h), w2, b2))
    return x + h


if __name__ == "__main__":
    N, C, H, W = 2, 4, 16, 16
    key = jax.random.PRNGKey(0)
    k1, k2, k3, k4, k5 = jax.random.split(key, 5)
    x = jax.random.normal(k1, (N, C, H, W), jnp.float32)
    w1 = jax.random.normal(k2, (C, C, 3, 3), jnp.float32) * 0.2
    b1 = jax.random.normal(k3, (C,), jnp.float32) * 0.1
    w2 = jax.random.normal(k4, (C, C, 3, 3), jnp.float32) * 0.2
    b2 = jax.random.normal(k5, (C,), jnp.float32) * 0.1

    out = resnet_block(x, w1, b1, w2, b2)
    jax.block_until_ready(out)

    ref = ref_resnet_block(x, w1, b1, w2, b2)
    err = float(jnp.max(jnp.abs(out - ref)))
    assert jnp.allclose(out, ref, atol=1e-4, rtol=1e-4), f"max abs err = {err}"
    print("KERNEL_OK")
</pallas_src>

<mosaic_0001>
module attributes {stable_mosaic.version = 11 : i64} {
  func.func @kernel(%arg0: i32, %arg1: memref<1x4x256xf32, #tpu.memory_space<vmem>>, %arg2: memref<4x36xf32, #tpu.memory_space<vmem>>, %arg3: memref<4x36xf32, #tpu.memory_space<vmem>>, %arg4: memref<1x4x256xf32, #tpu.memory_space<vmem>>) attributes {dimension_semantics = [#tpu.dimension_semantics<parallel>], iteration_bounds = array<i64: 2>, scalar_prefetch = 0 : i64, scratch_operands = 0 : i64, tpu.core_type = #tpu.core_type<tc>, window_params = [{transform_indices = @transform_0, window_bounds = array<i64: 1, 4, 256>}, {pipeline_mode = #tpu.pipeline_mode<synchronous>, transform_indices = @transform_1, window_bounds = array<i64: 4, 36>}, {pipeline_mode = #tpu.pipeline_mode<synchronous>, transform_indices = @transform_2, window_bounds = array<i64: 4, 36>}, {transform_indices = @transform_3, window_bounds = array<i64: 1, 4, 256>}]} {
    %c0 = arith.constant 0 : index
    %c0_0 = arith.constant 0 : index
    %c0_1 = arith.constant 0 : index
    %0 = vector.load %arg1[%c0, %c0_0, %c0_1] : memref<1x4x256xf32, #tpu.memory_space<vmem>>, vector<1x4x256xf32>
    %1 = vector.shape_cast %0 : vector<1x4x256xf32> to vector<4x256xf32>
    %2 = tpu.iota {dimensions = array<i32: 1>} : vector<4x256xi32>
    %c16_i32 = arith.constant 16 : i32
    %3 = vector.broadcast %c16_i32 : i32 to vector<4x256xi32>
    %4 = arith.cmpi slt, %2, %3 : vector<4x256xi32>
    %c240_i32 = arith.constant 240 : i32
    %5 = vector.broadcast %c240_i32 : i32 to vector<4x256xi32>
    %6 = arith.cmpi sge, %2, %5 : vector<4x256xi32>
    %c15_i32 = arith.constant 15 : i32
    %7 = vector.broadcast %c15_i32 : i32 to vector<4x256xi32>
    %8 = arith.andi %2, %7 : vector<4x256xi32>
    %c0_i32 = arith.constant 0 : i32
    %9 = vector.broadcast %c0_i32 : i32 to vector<4x256xi32>
    %10 = arith.cmpi eq, %8, %9 : vector<4x256xi32>
    %c15_i32_2 = arith.constant 15 : i32
    %11 = vector.broadcast %c15_i32_2 : i32 to vector<4x256xi32>
    %12 = arith.cmpi eq, %8, %11 : vector<4x256xi32>
    %c0_3 = arith.constant 0 : index
    %c0_4 = arith.constant 0 : index
    %13 = vector.load %arg2[%c0_3, %c0_4] : memref<4x36xf32, #tpu.memory_space<vmem>>, vector<4x36xf32>
    %c0_5 = arith.constant 0 : index
    %c0_6 = arith.constant 0 : index
    %14 = vector.load %arg3[%c0_5, %c0_6] : memref<4x36xf32, #tpu.memory_space<vmem>>, vector<4x36xf32>
    %c240_i32_7 = arith.constant 240 : i32
    %15 = tpu.dynamic_rotate %1 by %c240_i32_7 dim 1 : vector<4x256xf32>, i32 -> vector<4x256xf32>
    %c16_i32_8 = arith.constant 16 : i32
    %16 = tpu.dynamic_rotate %1 by %c16_i32_8 dim 1 : vector<4x256xf32>, i32 -> vector<4x256xf32>
    %17 = arith.select %4, %15, %16 : vector<4x256xi1>, vector<4x256xf32>
    %18 = arith.select %6, %16, %15 : vector<4x256xi1>, vector<4x256xf32>
    %c255_i32 = arith.constant 255 : i32
    %19 = tpu.dynamic_rotate %17 by %c255_i32 dim 1 : vector<4x256xf32>, i32 -> vector<4x256xf32>
    %c1_i32 = arith.constant 1 : i32
    %20 = tpu.dynamic_rotate %17 by %c1_i32 dim 1 : vector<4x256xf32>, i32 -> vector<4x256xf32>
    %21 = arith.select %10, %19, %20 : vector<4x256xi1>, vector<4x256xf32>
    %22 = arith.select %12, %20, %19 : vector<4x256xi1>, vector<4x256xf32>
    %c255_i32_9 = arith.constant 255 : i32
    %23 = tpu.dynamic_rotate %1 by %c255_i32_9 dim 1 : vector<4x256xf32>, i32 -> vector<4x256xf32>
    %c1_i32_10 = arith.constant 1 : i32
    %24 = tpu.dynamic_rotate %1 by %c1_i32_10 dim 1 : vector<4x256xf32>, i32 -> vector<4x256xf32>
    %25 = arith.select %10, %23, %24 : vector<4x256xi1>, vector<4x256xf32>
    %26 = arith.select %12, %24, %23 : vector<4x256xi1>, vector<4x256xf32>
    %c255_i32_11 = arith.constant 255 : i32
    %27 = tpu.dynamic_rotate %18 by %c255_i32_11 dim 1 : vector<4x256xf32>, i32 -> vector<4x256xf32>
    %c1_i32_12 = arith.constant 1 : i32
    %28 = tpu.dynamic_rotate %18 by %c1_i32_12 dim 1 : vector<4x256xf32>, i32 -> vector<4x256xf32>
    %29 = arith.select %10, %27, %28 : vector<4x256xi1>, vector<4x256xf32>
    %30 = arith.select %12, %28, %27 : vector<4x256xi1>, vector<4x256xf32>
    %cst = arith.constant 0.000000e+00 : f32
    %31 = vector.broadcast %cst : f32 to vector<4x256xf32>
    %32 = vector.extract_strided_slice %13 {offsets = [0, 0], sizes = [4, 1], strides = [1, 1]} : vector<4x36xf32> to vector<4x1xf32>
    %33 = vector.extract_strided_slice %21 {offsets = [0, 0], sizes = [1, 256], strides = [1, 1]} : vector<4x256xf32> to vector<1x256xf32>
    %34 = vector.broadcast %32 : vector<4x1xf32> to vector<4x256xf32>
    %35 = vector.broadcast %33 : vector<1x256xf32> to vector<4x256xf32>
    %36 = arith.mulf %34, %35 : vector<4x256xf32>
    %37 = arith.addf %31, %36 : vector<4x256xf32>
    %38 = vector.extract_strided_slice %13 {offsets = [0, 1], sizes = [4, 1], strides = [1, 1]} : vector<4x36xf32> to vector<4x1xf32>
    %39 = vector.extract_strided_slice %21 {offsets = [1, 0], sizes = [1, 256], strides = [1, 1]} : vector<4x256xf32> to vector<1x256xf32>
    %40 = vector.broadcast %38 : vector<4x1xf32> to vector<4x256xf32>
    %41 = vector.broadcast %39 : vector<1x256xf32> to vector<4x256xf32>
    %42 = arith.mulf %40, %41 : vector<4x256xf32>
    %43 = arith.addf %37, %42 : vector<4x256xf32>
    %44 = vector.extract_strided_slice %13 {offsets = [0, 2], sizes = [4, 1], strides = [1, 1]} : vector<4x36xf32> to vector<4x1xf32>
    %45 = vector.extract_strided_slice %21 {offsets = [2, 0], sizes = [1, 256], strides = [1, 1]} : vector<4x256xf32> to vector<1x256xf32>
    %46 = vector.broadcast %44 : vector<4x1xf32> to vector<4x256xf32>
    %47 = vector.broadcast %45 : vector<1x256xf32> to vector<4x256xf32>
    %48 = arith.mulf %46, %47 : vector<4x256xf32>
    %49 = arith.addf %43, %48 : vector<4x256xf32>
    %50 = vector.extract_strided_slice %13 {offsets = [0, 3], sizes = [4, 1], strides = [1, 1]} : vector<4x36xf32> to vector<4x1xf32>
    %51 = vector.extract_strided_slice %21 {offsets = [3, 0], sizes = [1, 256], strides = [1, 1]} : vector<4x256xf32> to vector<1x256xf32>
    %52 = vector.broadcast %50 : vector<4x1xf32> to vector<4x256xf32>
    %53 = vector.broadcast %51 : vector<1x256xf32> to vector<4x256xf32>
    %54 = arith.mulf %52, %53 : vector<4x256xf32>
    %55 = arith.addf %49, %54 : vector<4x256xf32>
    %56 = vector.extract_strided_slice %13 {offsets = [0, 4], sizes = [4, 1], strides = [1, 1]} : vector<4x36xf32> to vector<4x1xf32>
    %57 = vector.extract_strided_slice %17 {offsets = [0, 0], sizes = [1, 256], strides = [1, 1]} : vector<4x256xf32> to vector<1x256xf32>
    %58 = vector.broadcast %56 : vector<4x1xf32> to vector<4x256xf32>
    %59 = vector.broadcast %57 : vector<1x256xf32> to vector<4x256xf32>
    %60 = arith.mulf %58, %59 : vector<4x256xf32>
    %61 = arith.addf %55, %60 : vector<4x256xf32>
    %62 = vector.extract_strided_slice %13 {offsets = [0, 5], sizes = [4, 1], strides = [1, 1]} : vector<4x36xf32> to vector<4x1xf32>
    %63 = vector.extract_strided_slice %17 {offsets = [1, 0], sizes = [1, 256], strides = [1, 1]} : vector<4x256xf32> to vector<1x256xf32>
    %64 = vector.broadcast %62 : vector<4x1xf32> to vector<4x256xf32>
    %65 = vector.broadcast %63 : vector<1x256xf32> to vector<4x256xf32>
    %66 = arith.mulf %64, %65 : vector<4x256xf32>
    %67 = arith.addf %61, %66 : vector<4x256xf32>
    %68 = vector.extract_strided_slice %13 {offsets = [0, 6], sizes = [4, 1], strides = [1, 1]} : vector<4x36xf32> to vector<4x1xf32>
    %69 = vector.extract_strided_slice %17 {offsets = [2, 0], sizes = [1, 256], strides = [1, 1]} : vector<4x256xf32> to vector<1x256xf32>
    %70 = vector.broadcast %68 : vector<4x1xf32> to vector<4x256xf32>
    %71 = vector.broadcast %69 : vector<1x256xf32> to vector<4x256xf32>
    %72 = arith.mulf %70, %71 : vector<4x256xf32>
    %73 = arith.addf %67, %72 : vector<4x256xf32>
    %74 = vector.extract_strided_slice %13 {offsets = [0, 7], sizes = [4, 1], strides = [1, 1]} : vector<4x36xf32> to vector<4x1xf32>
    %75 = vector.extract_strided_slice %17 {offsets = [3, 0], sizes = [1, 256], strides = [1, 1]} : vector<4x256xf32> to vector<1x256xf32>
    %76 = vector.broadcast %74 : vector<4x1xf32> to vector<4x256xf32>
    %77 = vector.broadcast %75 : vector<1x256xf32> to vector<4x256xf32>
    %78 = arith.mulf %76, %77 : vector<4x256xf32>
    %79 = arith.addf %73, %78 : vector<4x256xf32>
    %80 = vector.extract_strided_slice %13 {offsets = [0, 8], sizes = [4, 1], strides = [1, 1]} : vector<4x36xf32> to vector<4x1xf32>
    %81 = vector.extract_strided_slice %22 {offsets = [0, 0], sizes = [1, 256], strides = [1, 1]} : vector<4x256xf32> to vector<1x256xf32>
    %82 = vector.broadcast %80 : vector<4x1xf32> to vector<4x256xf32>
    %83 = vector.broadcast %81 : vector<1x256xf32> to vector<4x256xf32>
    %84 = arith.mulf %82, %83 : vector<4x256xf32>
    %85 = arith.addf %79, %84 : vector<4x256xf32>
    %86 = vector.extract_strided_slice %13 {offsets = [0, 9], sizes = [4, 1], strides = [1, 1]} : vector<4x36xf32> to vector<4x1xf32>
    %87 = vector.extract_strided_slice %22 {offsets = [1, 0], sizes = [1, 256], strides = [1, 1]} : vector<4x256xf32> to vector<1x256xf32>
    %88 = vector.broadcast %86 : vector<4x1xf32> to vector<4x256xf32>
    %89 = vector.broadcast %87 : vector<1x256xf32> to vector<4x256xf32>
    %90 = arith.mulf %88, %89 : vector<4x256xf32>
    %91 = arith.addf %85, %90 : vector<4x256xf32>
    %92 = vector.extract_strided_slice %13 {offsets = [0, 10], sizes = [4, 1], strides = [1, 1]} : vector<4x36xf32> to vector<4x1xf32>
    %93 = vector.extract_strided_slice %22 {offsets = [2, 0], sizes = [1, 256], strides = [1, 1]} : vector<4x256xf32> to vector<1x256xf32>
    %94 = vector.broadcast %92 : vector<4x1xf32> to vector<4x256xf32>
    %95 = vector.broadcast %93 : vector<1x256xf32> to vector<4x256xf32>
    %96 = arith.mulf %94, %95 : vector<4x256xf32>
    %97 = arith.addf %91, %96 : vector<4x256xf32>
    %98 = vector.extract_strided_slice %13 {offsets = [0, 11], sizes = [4, 1], strides = [1, 1]} : vector<4x36xf32> to vector<4x1xf32>
    %99 = vector.extract_strided_slice %22 {offsets = [3, 0], sizes = [1, 256], strides = [1, 1]} : vector<4x256xf32> to vector<1x256xf32>
    %100 = vector.broadcast %98 : vector<4x1xf32> to vector<4x256xf32>
    %101 = vector.broadcast %99 : vector<1x256xf32> to vector<4x256xf32>
    %102 = arith.mulf %100, %101 : vector<4x256xf32>
    %103 = arith.addf %97, %102 : vector<4x256xf32>
    %104 = vector.extract_strided_slice %13 {offsets = [0, 12], sizes = [4, 1], strides = [1, 1]} : vector<4x36xf32> to vector<4x1xf32>
    %105 = vector.extract_strided_slice %25 {offsets = [0, 0], sizes = [1, 256], strides = [1, 1]} : vector<4x256xf32> to vector<1x256xf32>
    %106 = vector.broadcast %104 : vector<4x1xf32> to vector<4x256xf32>
    %107 = vector.broadcast %105 : vector<1x256xf32> to vector<4x256xf32>
    %108 = arith.mulf %106, %107 : vector<4x256xf32>
    %109 = arith.addf %103, %108 : vector<4x256xf32>
    %110 = vector.extract_strided_slice %13 {offsets = [0, 13], sizes = [4, 1], strides = [1, 1]} : vector<4x36xf32> to vector<4x1xf32>
    %111 = vector.extract_strided_slice %25 {offsets = [1, 0], sizes = [1, 256], strides = [1, 1]} : vector<4x256xf32> to vector<1x256xf32>
    %112 = vector.broadcast %110 : vector<4x1xf32> to vector<4x256xf32>
    %113 = vector.broadcast %111 : vector<1x256xf32> to vector<4x256xf32>
    %114 = arith.mulf %112, %113 : vector<4x256xf32>
    %115 = arith.addf %109, %114 : vector<4x256xf32>
    %116 = vector.extract_strided_slice %13 {offsets = [0, 14], sizes = [4, 1], strides = [1, 1]} : vector<4x36xf32> to vector<4x1xf32>
    %117 = vector.extract_strided_slice %25 {offsets = [2, 0], sizes = [1, 256], strides = [1, 1]} : vector<4x256xf32> to vector<1x256xf32>
    %118 = vector.broadcast %116 : vector<4x1xf32> to vector<4x256xf32>
    %119 = vector.broadcast %117 : vector<1x256xf32> to vector<4x256xf32>
    %120 = arith.mulf %118, %119 : vector<4x256xf32>
    %121 = arith.addf %115, %120 : vector<4x256xf32>
    %122 = vector.extract_strided_slice %13 {offsets = [0, 15], sizes = [4, 1], strides = [1, 1]} : vector<4x36xf32> to vector<4x1xf32>
    %123 = vector.extract_strided_slice %25 {offsets = [3, 0], sizes = [1, 256], strides = [1, 1]} : vector<4x256xf32> to vector<1x256xf32>
    %124 = vector.broadcast %122 : vector<4x1xf32> to vector<4x256xf32>
    %125 = vector.broadcast %123 : vector<1x256xf32> to vector<4x256xf32>
    %126 = arith.mulf %124, %125 : vector<4x256xf32>
    %127 = arith.addf %121, %126 : vector<4x256xf32>
    %128 = vector.extract_strided_slice %13 {offsets = [0, 16], sizes = [4, 1], strides = [1, 1]} : vector<4x36xf32> to vector<4x1xf32>
    %129 = vector.extract_strided_slice %1 {offsets = [0, 0], sizes = [1, 256], strides = [1, 1]} : vector<4x256xf32> to vector<1x256xf32>
    %130 = vector.broadcast %128 : vector<4x1xf32> to vector<4x256xf32>
    %131 = vector.broadcast %129 : vector<1x256xf32> to vector<4x256xf32>
    %132 = arith.mulf %130, %131 : vector<4x256xf32>
    %133 = arith.addf %127, %132 : vector<4x256xf32>
    %134 = vector.extract_strided_slice %13 {offsets = [0, 17], sizes = [4, 1], strides = [1, 1]} : vector<4x36xf32> to vector<4x1xf32>
    %135 = vector.extract_strided_slice %1 {offsets = [1, 0], sizes = [1, 256], strides = [1, 1]} : vector<4x256xf32> to vector<1x256xf32>
    %136 = vector.broadcast %134 : vector<4x1xf32> to vector<4x256xf32>
    %137 = vector.broadcast %135 : vector<1x256xf32> to vector<4x256xf32>
    %138 = arith.mulf %136, %137 : vector<4x256xf32>
    %139 = arith.addf %133, %138 : vector<4x256xf32>
    %140 = vector.extract_strided_slice %13 {offsets = [0, 18], sizes = [4, 1], strides = [1, 1]} : vector<4x36xf32> to vector<4x1xf32>
    %141 = vector.extract_strided_slice %1 {offsets = [2, 0], sizes = [1, 256], strides = [1, 1]} : vector<4x256xf32> to vector<1x256xf32>
    %142 = vector.broadcast %140 : vector<4x1xf32> to vector<4x256xf32>
    %143 = vector.broadcast %141 : vector<1x256xf32> to vector<4x256xf32>
    %144 = arith.mulf %142, %143 : vector<4x256xf32>
    %145 = arith.addf %139, %144 : vector<4x256xf32>
    %146 = vector.extract_strided_slice %13 {offsets = [0, 19], sizes = [4, 1], strides = [1, 1]} : vector<4x36xf32> to vector<4x1xf32>
    %147 = vector.extract_strided_slice %1 {offsets = [3, 0], sizes = [1, 256], strides = [1, 1]} : vector<4x256xf32> to vector<1x256xf32>
    %148 = vector.broadcast %146 : vector<4x1xf32> to vector<4x256xf32>
    %149 = vector.broadcast %147 : vector<1x256xf32> to vector<4x256xf32>
    %150 = arith.mulf %148, %149 : vector<4x256xf32>
    %151 = arith.addf %145, %150 : vector<4x256xf32>
    %152 = vector.extract_strided_slice %13 {offsets = [0, 20], sizes = [4, 1], strides = [1, 1]} : vector<4x36xf32> to vector<4x1xf32>
    %153 = vector.extract_strided_slice %26 {offsets = [0, 0], sizes = [1, 256], strides = [1, 1]} : vector<4x256xf32> to vector<1x256xf32>
    %154 = vector.broadcast %152 : vector<4x1xf32> to vector<4x256xf32>
    %155 = vector.broadcast %153 : vector<1x256xf32> to vector<4x256xf32>
    %156 = arith.mulf %154, %155 : vector<4x256xf32>
    %157 = arith.addf %151, %156 : vector<4x256xf32>
    %158 = vector.extract_strided_slice %13 {offsets = [0, 21], sizes = [4, 1], strides = [1, 1]} : vector<4x36xf32> to vector<4x1xf32>
    %159 = vector.extract_strided_slice %26 {offsets = [1, 0], sizes = [1, 256], strides = [1, 1]} : vector<4x256xf32> to vector<1x256xf32>
    %160 = vector.broadcast %158 : vector<4x1xf32> to vector<4x256xf32>
    %161 = vector.broadcast %159 : vector<1x256xf32> to vector<4x256xf32>
    %162 = arith.mulf %160, %161 : vector<4x256xf32>
    %163 = arith.addf %157, %162 : vector<4x256xf32>
    %164 = vector.extract_strided_slice %13 {offsets = [0, 22], sizes = [4, 1], strides = [1, 1]} : vector<4x36xf32> to vector<4x1xf32>
    %165 = vector.extract_strided_slice %26 {offsets = [2, 0], sizes = [1, 256], strides = [1, 1]} : vector<4x256xf32> to vector<1x256xf32>
    %166 = vector.broadcast %164 : vector<4x1xf32> to vector<4x256xf32>
    %167 = vector.broadcast %165 : vector<1x256xf32> to vector<4x256xf32>
    %168 = arith.mulf %166, %167 : vector<4x256xf32>
    %169 = arith.addf %163, %168 : vector<4x256xf32>
    %170 = vector.extract_strided_slice %13 {offsets = [0, 23], sizes = [4, 1], strides = [1, 1]} : vector<4x36xf32> to vector<4x1xf32>
    %171 = vector.extract_strided_slice %26 {offsets = [3, 0], sizes = [1, 256], strides = [1, 1]} : vector<4x256xf32> to vector<1x256xf32>
    %172 = vector.broadcast %170 : vector<4x1xf32> to vector<4x256xf32>
    %173 = vector.broadcast %171 : vector<1x256xf32> to vector<4x256xf32>
    %174 = arith.mulf %172, %173 : vector<4x256xf32>
    %175 = arith.addf %169, %174 : vector<4x256xf32>
    %176 = vector.extract_strided_slice %13 {offsets = [0, 24], sizes = [4, 1], strides = [1, 1]} : vector<4x36xf32> to vector<4x1xf32>
    %177 = vector.extract_strided_slice %29 {offsets = [0, 0], sizes = [1, 256], strides = [1, 1]} : vector<4x256xf32> to vector<1x256xf32>
    %178 = vector.broadcast %176 : vector<4x1xf32> to vector<4x256xf32>
    %179 = vector.broadcast %177 : vector<1x256xf32> to vector<4x256xf32>
    %180 = arith.mulf %178, %179 : vector<4x256xf32>
    %181 = arith.addf %175, %180 : vector<4x256xf32>
    %182 = vector.extract_strided_slice %13 {offsets = [0, 25], sizes = [4, 1], strides = [1, 1]} : vector<4x36xf32> to vector<4x1xf32>
    %183 = vector.extract_strided_slice %29 {offsets = [1, 0], sizes = [1, 256], strides = [1, 1]} : vector<4x256xf32> to vector<1x256xf32>
    %184 = vector.broadcast %182 : vector<4x1xf32> to vector<4x256xf32>
    %185 = vector.broadcast %183 : vector<1x256xf32> to vector<4x256xf32>
    %186 = arith.mulf %184, %185 : vector<4x256xf32>
    %187 = arith.addf %181, %186 : vector<4x256xf32>
    %188 = vector.extract_strided_slice %13 {offsets = [0, 26], sizes = [4, 1], strides = [1, 1]} : vector<4x36xf32> to vector<4x1xf32>
    %189 = vector.extract_strided_slice %29 {offsets = [2, 0], sizes = [1, 256], strides = [1, 1]} : vector<4x256xf32> to vector<1x256xf32>
    %190 = vector.broadcast %188 : vector<4x1xf32> to vector<4x256xf32>
    %191 = vector.broadcast %189 : vector<1x256xf32> to vector<4x256xf32>
    %192 = arith.mulf %190, %191 : vector<4x256xf32>
    %193 = arith.addf %187, %192 : vector<4x256xf32>
    %194 = vector.extract_strided_slice %13 {offsets = [0, 27], sizes = [4, 1], strides = [1, 1]} : vector<4x36xf32> to vector<4x1xf32>
    %195 = vector.extract_strided_slice %29 {offsets = [3, 0], sizes = [1, 256], strides = [1, 1]} : vector<4x256xf32> to vector<1x256xf32>
    %196 = vector.broadcast %194 : vector<4x1xf32> to vector<4x256xf32>
    %197 = vector.broadcast %195 : vector<1x256xf32> to vector<4x256xf32>
    %198 = arith.mulf %196, %197 : vector<4x256xf32>
    %199 = arith.addf %193, %198 : vector<4x256xf32>
    %200 = vector.extract_strided_slice %13 {offsets = [0, 28], sizes = [4, 1], strides = [1, 1]} : vector<4x36xf32> to vector<4x1xf32>
    %201 = vector.extract_strided_slice %18 {offsets = [0, 0], sizes = [1, 256], strides = [1, 1]} : vector<4x256xf32> to vector<1x256xf32>
    %202 = vector.broadcast %200 : vector<4x1xf32> to vector<4x256xf32>
    %203 = vector.broadcast %201 : vector<1x256xf32> to vector<4x256xf32>
    %204 = arith.mulf %202, %203 : vector<4x256xf32>
    %205 = arith.addf %199, %204 : vector<4x256xf32>
    %206 = vector.extract_strided_slice %13 {offsets = [0, 29], sizes = [4, 1], strides = [1, 1]} : vector<4x36xf32> to vector<4x1xf32>
    %207 = vector.extract_strided_slice %18 {offsets = [1, 0], sizes = [1, 256], strides = [1, 1]} : vector<4x256xf32> to vector<1x256xf32>
    %208 = vector.broadcast %206 : vector<4x1xf32> to vector<4x256xf32>
    %209 = vector.broadcast %207 : vector<1x256xf32> to vector<4x256xf32>
    %210 = arith.mulf %208, %209 : vector<4x256xf32>
    %211 = arith.addf %205, %210 : vector<4x256xf32>
    %212 = vector.extract_strided_slice %13 {offsets = [0, 30], sizes = [4, 1], strides = [1, 1]} : vector<4x36xf32> to vector<4x1xf32>
    %213 = vector.extract_strided_slice %18 {offsets = [2, 0], sizes = [1, 256], strides = [1, 1]} : vector<4x256xf32> to vector<1x256xf32>
    %214 = vector.broadcast %212 : vector<4x1xf32> to vector<4x256xf32>
    %215 = vector.broadcast %213 : vector<1x256xf32> to vector<4x256xf32>
    %216 = arith.mulf %214, %215 : vector<4x256xf32>
    %217 = arith.addf %211, %216 : vector<4x256xf32>
    %218 = vector.extract_strided_slice %13 {offsets = [0, 31], sizes = [4, 1], strides = [1, 1]} : vector<4x36xf32> to vector<4x1xf32>
    %219 = vector.extract_strided_slice %18 {offsets = [3, 0], sizes = [1, 256], strides = [1, 1]} : vector<4x256xf32> to vector<1x256xf32>
    %220 = vector.broadcast %218 : vector<4x1xf32> to vector<4x256xf32>
    %221 = vector.broadcast %219 : vector<1x256xf32> to vector<4x256xf32>
    %222 = arith.mulf %220, %221 : vector<4x256xf32>
    %223 = arith.addf %217, %222 : vector<4x256xf32>
    %224 = vector.extract_strided_slice %13 {offsets = [0, 32], sizes = [4, 1], strides = [1, 1]} : vector<4x36xf32> to vector<4x1xf32>
    %225 = vector.extract_strided_slice %30 {offsets = [0, 0], sizes = [1, 256], strides = [1, 1]} : vector<4x256xf32> to vector<1x256xf32>
    %226 = vector.broadcast %224 : vector<4x1xf32> to vector<4x256xf32>
    %227 = vector.broadcast %225 : vector<1x256xf32> to vector<4x256xf32>
    %228 = arith.mulf %226, %227 : vector<4x256xf32>
    %229 = arith.addf %223, %228 : vector<4x256xf32>
    %230 = vector.extract_strided_slice %13 {offsets = [0, 33], sizes = [4, 1], strides = [1, 1]} : vector<4x36xf32> to vector<4x1xf32>
    %231 = vector.extract_strided_slice %30 {offsets = [1, 0], sizes = [1, 256], strides = [1, 1]} : vector<4x256xf32> to vector<1x256xf32>
    %232 = vector.broadcast %230 : vector<4x1xf32> to vector<4x256xf32>
    %233 = vector.broadcast %231 : vector<1x256xf32> to vector<4x256xf32>
    %234 = arith.mulf %232, %233 : vector<4x256xf32>
    %235 = arith.addf %229, %234 : vector<4x256xf32>
    %236 = vector.extract_strided_slice %13 {offsets = [0, 34], sizes = [4, 1], strides = [1, 1]} : vector<4x36xf32> to vector<4x1xf32>
    %237 = vector.extract_strided_slice %30 {offsets = [2, 0], sizes = [1, 256], strides = [1, 1]} : vector<4x256xf32> to vector<1x256xf32>
    %238 = vector.broadcast %236 : vector<4x1xf32> to vector<4x256xf32>
    %239 = vector.broadcast %237 : vector<1x256xf32> to vector<4x256xf32>
    %240 = arith.mulf %238, %239 : vector<4x256xf32>
    %241 = arith.addf %235, %240 : vector<4x256xf32>
    %242 = vector.extract_strided_slice %13 {offsets = [0, 35], sizes = [4, 1], strides = [1, 1]} : vector<4x36xf32> to vector<4x1xf32>
    %243 = vector.extract_strided_slice %30 {offsets = [3, 0], sizes = [1, 256], strides = [1, 1]} : vector<4x256xf32> to vector<1x256xf32>
    %244 = vector.broadcast %242 : vector<4x1xf32> to vector<4x256xf32>
    %245 = vector.broadcast %243 : vector<1x256xf32> to vector<4x256xf32>
    %246 = arith.mulf %244, %245 : vector<4x256xf32>
    %247 = arith.addf %241, %246 : vector<4x256xf32>
    %cst_13 = arith.constant dense<0.000000e+00> : vector<4xf32>
    %248 = vector.multi_reduction <add>, %247, %cst_13 [1] : vector<4x256xf32> to vector<4xf32>
    %249 = vector.shape_cast %248 : vector<4xf32> to vector<4x1xf32>
    %cst_14 = arith.constant 2.560000e+02 : f32
    %250 = vector.broadcast %cst_14 : f32 to vector<4x1xf32>
    %251 = arith.divf %249, %250 : vector<4x1xf32>
    %252 = arith.mulf %247, %247 : vector<4x256xf32>
    %cst_15 = arith.constant dense<0.000000e+00> : vector<4xf32>
    %253 = vector.multi_reduction <add>, %252, %cst_15 [1] : vector<4x256xf32> to vector<4xf32>
    %254 = vector.shape_cast %253 : vector<4xf32> to vector<4x1xf32>
    %cst_16 = arith.constant 2.560000e+02 : f32
    %255 = vector.broadcast %cst_16 : f32 to vector<4x1xf32>
    %256 = arith.divf %254, %255 : vector<4x1xf32>
    %257 = vector.broadcast %251 : vector<4x1xf32> to vector<4x256xf32>
    %258 = arith.subf %247, %257 : vector<4x256xf32>
    %259 = arith.mulf %251, %251 : vector<4x1xf32>
    %260 = arith.subf %256, %259 : vector<4x1xf32>
    %cst_17 = arith.constant 9.99999974E-6 : f32
    %261 = vector.broadcast %cst_17 : f32 to vector<4x1xf32>
    %262 = arith.addf %260, %261 : vector<4x1xf32>
    %263 = math.rsqrt %262 : vector<4x1xf32>
    %264 = vector.broadcast %263 : vector<4x1xf32> to vector<4x256xf32>
    %265 = arith.mulf %258, %264 : vector<4x256xf32>
    %cst_18 = arith.constant 0.000000e+00 : f32
    %266 = vector.broadcast %cst_18 : f32 to vector<4x256xf32>
    %267 = arith.maximumf %265, %266 : vector<4x256xf32>
    %c240_i32_19 = arith.constant 240 : i32
    %268 = tpu.dynamic_rotate %267 by %c240_i32_19 dim 1 : vector<4x256xf32>, i32 -> vector<4x256xf32>
    %c16_i32_20 = arith.constant 16 : i32
    %269 = tpu.dynamic_rotate %267 by %c16_i32_20 dim 1 : vector<4x256xf32>, i32 -> vector<4x256xf32>
    %270 = arith.select %4, %268, %269 : vector<4x256xi1>, vector<4x256xf32>
    %271 = arith.select %6, %269, %268 : vector<4x256xi1>, vector<4x256xf32>
    %c255_i32_21 = arith.constant 255 : i32
    %272 = tpu.dynamic_rotate %270 by %c255_i32_21 dim 1 : vector<4x256xf32>, i32 -> vector<4x256xf32>
    %c1_i32_22 = arith.constant 1 : i32
    %273 = tpu.dynamic_rotate %270 by %c1_i32_22 dim 1 : vector<4x256xf32>, i32 -> vector<4x256xf32>
    %274 = arith.select %10, %272, %273 : vector<4x256xi1>, vector<4x256xf32>
    %275 = arith.select %12, %273, %272 : vector<4x256xi1>, vector<4x256xf32>
    %c255_i32_23 = arith.constant 255 : i32
    %276 = tpu.dynamic_rotate %267 by %c255_i32_23 dim 1 : vector<4x256xf32>, i32 -> vector<4x256xf32>
    %c1_i32_24 = arith.constant 1 : i32
    %277 = tpu.dynamic_rotate %267 by %c1_i32_24 dim 1 : vector<4x256xf32>, i32 -> vector<4x256xf32>
    %278 = arith.select %10, %276, %277 : vector<4x256xi1>, vector<4x256xf32>
    %279 = arith.select %12, %277, %276 : vector<4x256xi1>, vector<4x256xf32>
    %c255_i32_25 = arith.constant 255 : i32
    %280 = tpu.dynamic_rotate %271 by %c255_i32_25 dim 1 : vector<4x256xf32>, i32 -> vector<4x256xf32>
    %c1_i32_26 = arith.constant 1 : i32
    %281 = tpu.dynamic_rotate %271 by %c1_i32_26 dim 1 : vector<4x256xf32>, i32 -> vector<4x256xf32>
    %282 = arith.select %10, %280, %281 : vector<4x256xi1>, vector<4x256xf32>
    %283 = arith.select %12, %281, %280 : vector<4x256xi1>, vector<4x256xf32>
    %cst_27 = arith.constant 0.000000e+00 : f32
    %284 = vector.broadcast %cst_27 : f32 to vector<4x256xf32>
    %285 = vector.extract_strided_slice %14 {offsets = [0, 0], sizes = [4, 1], strides = [1, 1]} : vector<4x36xf32> to vector<4x1xf32>
    %286 = vector.extract_strided_slice %274 {offsets = [0, 0], sizes = [1, 256], strides = [1, 1]} : vector<4x256xf32> to vector<1x256xf32>
    %287 = vector.broadcast %285 : vector<4x1xf32> to vector<4x256xf32>
    %288 = vector.broadcast %286 : vector<1x256xf32> to vector<4x256xf32>
    %289 = arith.mulf %287, %288 : vector<4x256xf32>
    %290 = arith.addf %284, %289 : vector<4x256xf32>
    %291 = vector.extract_strided_slice %14 {offsets = [0, 1], sizes = [4, 1], strides = [1, 1]} : vector<4x36xf32> to vector<4x1xf32>
    %292 = vector.extract_strided_slice %274 {offsets = [1, 0], sizes = [1, 256], strides = [1, 1]} : vector<4x256xf32> to vector<1x256xf32>
    %293 = vector.broadcast %291 : vector<4x1xf32> to vector<4x256xf32>
    %294 = vector.broadcast %292 : vector<1x256xf32> to vector<4x256xf32>
    %295 = arith.mulf %293, %294 : vector<4x256xf32>
    %296 = arith.addf %290, %295 : vector<4x256xf32>
    %297 = vector.extract_strided_slice %14 {offsets = [0, 2], sizes = [4, 1], strides = [1, 1]} : vector<4x36xf32> to vector<4x1xf32>
    %298 = vector.extract_strided_slice %274 {offsets = [2, 0], sizes = [1, 256], strides = [1, 1]} : vector<4x256xf32> to vector<1x256xf32>
    %299 = vector.broadcast %297 : vector<4x1xf32> to vector<4x256xf32>
    %300 = vector.broadcast %298 : vector<1x256xf32> to vector<4x256xf32>
    %301 = arith.mulf %299, %300 : vector<4x256xf32>
    %302 = arith.addf %296, %301 : vector<4x256xf32>
    %303 = vector.extract_strided_slice %14 {offsets = [0, 3], sizes = [4, 1], strides = [1, 1]} : vector<4x36xf32> to vector<4x1xf32>
    %304 = vector.extract_strided_slice %274 {offsets = [3, 0], sizes = [1, 256], strides = [1, 1]} : vector<4x256xf32> to vector<1x256xf32>
    %305 = vector.broadcast %303 : vector<4x1xf32> to vector<4x256xf32>
    %306 = vector.broadcast %304 : vector<1x256xf32> to vector<4x256xf32>
    %307 = arith.mulf %305, %306 : vector<4x256xf32>
    %308 = arith.addf %302, %307 : vector<4x256xf32>
    %309 = vector.extract_strided_slice %14 {offsets = [0, 4], sizes = [4, 1], strides = [1, 1]} : vector<4x36xf32> to vector<4x1xf32>
    %310 = vector.extract_strided_slice %270 {offsets = [0, 0], sizes = [1, 256], strides = [1, 1]} : vector<4x256xf32> to vector<1x256xf32>
    %311 = vector.broadcast %309 : vector<4x1xf32> to vector<4x256xf32>
    %312 = vector.broadcast %310 : vector<1x256xf32> to vector<4x256xf32>
    %313 = arith.mulf %311, %312 : vector<4x256xf32>
    %314 = arith.addf %308, %313 : vector<4x256xf32>
    %315 = vector.extract_strided_slice %14 {offsets = [0, 5], sizes = [4, 1], strides = [1, 1]} : vector<4x36xf32> to vector<4x1xf32>
    %316 = vector.extract_strided_slice %270 {offsets = [1, 0], sizes = [1, 256], strides = [1, 1]} : vector<4x256xf32> to vector<1x256xf32>
    %317 = vector.broadcast %315 : vector<4x1xf32> to vector<4x256xf32>
    %318 = vector.broadcast %316 : vector<1x256xf32> to vector<4x256xf32>
    %319 = arith.mulf %317, %318 : vector<4x256xf32>
    %320 = arith.addf %314, %319 : vector<4x256xf32>
    %321 = vector.extract_strided_slice %14 {offsets = [0, 6], sizes = [4, 1], strides = [1, 1]} : vector<4x36xf32> to vector<4x1xf32>
    %322 = vector.extract_strided_slice %270 {offsets = [2, 0], sizes = [1, 256], strides = [1, 1]} : vector<4x256xf32> to vector<1x256xf32>
    %323 = vector.broadcast %321 : vector<4x1xf32> to vector<4x256xf32>
    %324 = vector.broadcast %322 : vector<1x256xf32> to vector<4x256xf32>
    %325 = arith.mulf %323, %324 : vector<4x256xf32>
    %326 = arith.addf %320, %325 : vector<4x256xf32>
    %327 = vector.extract_strided_slice %14 {offsets = [0, 7], sizes = [4, 1], strides = [1, 1]} : vector<4x36xf32> to vector<4x1xf32>
    %328 = vector.extract_strided_slice %270 {offsets = [3, 0], sizes = [1, 256], strides = [1, 1]} : vector<4x256xf32> to vector<1x256xf32>
    %329 = vector.broadcast %327 : vector<4x1xf32> to vector<4x256xf32>
    %330 = vector.broadcast %328 : vector<1x256xf32> to vector<4x256xf32>
    %331 = arith.mulf %329, %330 : vector<4x256xf32>
    %332 = arith.addf %326, %331 : vector<4x256xf32>
    %333 = vector.extract_strided_slice %14 {offsets = [0, 8], sizes = [4, 1], strides = [1, 1]} : vector<4x36xf32> to vector<4x1xf32>
    %334 = vector.extract_strided_slice %275 {offsets = [0, 0], sizes = [1, 256], strides = [1, 1]} : vector<4x256xf32> to vector<1x256xf32>
    %335 = vector.broadcast %333 : vector<4x1xf32> to vector<4x256xf32>
    %336 = vector.broadcast %334 : vector<1x256xf32> to vector<4x256xf32>
    %337 = arith.mulf %335, %336 : vector<4x256xf32>
    %338 = arith.addf %332, %337 : vector<4x256xf32>
    %339 = vector.extract_strided_slice %14 {offsets = [0, 9], sizes = [4, 1], strides = [1, 1]} : vector<4x36xf32> to vector<4x1xf32>
    %340 = vector.extract_strided_slice %275 {offsets = [1, 0], sizes = [1, 256], strides = [1, 1]} : vector<4x256xf32> to vector<1x256xf32>
    %341 = vector.broadcast %339 : vector<4x1xf32> to vector<4x256xf32>
    %342 = vector.broadcast %340 : vector<1x256xf32> to vector<4x256xf32>
    %343 = arith.mulf %341, %342 : vector<4x256xf32>
    %344 = arith.addf %338, %343 : vector<4x256xf32>
    %345 = vector.extract_strided_slice %14 {offsets = [0, 10], sizes = [4, 1], strides = [1, 1]} : vector<4x36xf32> to vector<4x1xf32>
    %346 = vector.extract_strided_slice %275 {offsets = [2, 0], sizes = [1, 256], strides = [1, 1]} : vector<4x256xf32> to vector<1x256xf32>
    %347 = vector.broadcast %345 : vector<4x1xf32> to vector<4x256xf32>
    %348 = vector.broadcast %346 : vector<1x256xf32> to vector<4x256xf32>
    %349 = arith.mulf %347, %348 : vector<4x256xf32>
    %350 = arith.addf %344, %349 : vector<4x256xf32>
    %351 = vector.extract_strided_slice %14 {offsets = [0, 11], sizes = [4, 1], strides = [1, 1]} : vector<4x36xf32> to vector<4x1xf32>
    %352 = vector.extract_strided_slice %275 {offsets = [3, 0], sizes = [1, 256], strides = [1, 1]} : vector<4x256xf32> to vector<1x256xf32>
    %353 = vector.broadcast %351 : vector<4x1xf32> to vector<4x256xf32>
    %354 = vector.broadcast %352 : vector<1x256xf32> to vector<4x256xf32>
    %355 = arith.mulf %353, %354 : vector<4x256xf32>
    %356 = arith.addf %350, %355 : vector<4x256xf32>
    %357 = vector.extract_strided_slice %14 {offsets = [0, 12], sizes = [4, 1], strides = [1, 1]} : vector<4x36xf32> to vector<4x1xf32>
    %358 = vector.extract_strided_slice %278 {offsets = [0, 0], sizes = [1, 256], strides = [1, 1]} : vector<4x256xf32> to vector<1x256xf32>
    %359 = vector.broadcast %357 : vector<4x1xf32> to vector<4x256xf32>
    %360 = vector.broadcast %358 : vector<1x256xf32> to vector<4x256xf32>
    %361 = arith.mulf %359, %360 : vector<4x256xf32>
    %362 = arith.addf %356, %361 : vector<4x256xf32>
    %363 = vector.extract_strided_slice %14 {offsets = [0, 13], sizes = [4, 1], strides = [1, 1]} : vector<4x36xf32> to vector<4x1xf32>
    %364 = vector.extract_strided_slice %278 {offsets = [1, 0], sizes = [1, 256], strides = [1, 1]} : vector<4x256xf32> to vector<1x256xf32>
    %365 = vector.broadcast %363 : vector<4x1xf32> to vector<4x256xf32>
    %366 = vector.broadcast %364 : vector<1x256xf32> to vector<4x256xf32>
    %367 = arith.mulf %365, %366 : vector<4x256xf32>
    %368 = arith.addf %362, %367 : vector<4x256xf32>
    %369 = vector.extract_strided_slice %14 {offsets = [0, 14], sizes = [4, 1], strides = [1, 1]} : vector<4x36xf32> to vector<4x1xf32>
    %370 = vector.extract_strided_slice %278 {offsets = [2, 0], sizes = [1, 256], strides = [1, 1]} : vector<4x256xf32> to vector<1x256xf32>
    %371 = vector.broadcast %369 : vector<4x1xf32> to vector<4x256xf32>
    %372 = vector.broadcast %370 : vector<1x256xf32> to vector<4x256xf32>
    %373 = arith.mulf %371, %372 : vector<4x256xf32>
    %374 = arith.addf %368, %373 : vector<4x256xf32>
    %375 = vector.extract_strided_slice %14 {offsets = [0, 15], sizes = [4, 1], strides = [1, 1]} : vector<4x36xf32> to vector<4x1xf32>
    %376 = vector.extract_strided_slice %278 {offsets = [3, 0], sizes = [1, 256], strides = [1, 1]} : vector<4x256xf32> to vector<1x256xf32>
    %377 = vector.broadcast %375 : vector<4x1xf32> to vector<4x256xf32>
    %378 = vector.broadcast %376 : vector<1x256xf32> to vector<4x256xf32>
    %379 = arith.mulf %377, %378 : vector<4x256xf32>
    %380 = arith.addf %374, %379 : vector<4x256xf32>
    %381 = vector.extract_strided_slice %14 {offsets = [0, 16], sizes = [4, 1], strides = [1, 1]} : vector<4x36xf32> to vector<4x1xf32>
    %382 = vector.extract_strided_slice %267 {offsets = [0, 0], sizes = [1, 256], strides = [1, 1]} : vector<4x256xf32> to vector<1x256xf32>
    %383 = vector.broadcast %381 : vector<4x1xf32> to vector<4x256xf32>
    %384 = vector.broadcast %382 : vector<1x256xf32> to vector<4x256xf32>
    %385 = arith.mulf %383, %384 : vector<4x256xf32>
    %386 = arith.addf %380, %385 : vector<4x256xf32>
    %387 = vector.extract_strided_slice %14 {offsets = [0, 17], sizes = [4, 1], strides = [1, 1]} : vector<4x36xf32> to vector<4x1xf32>
    %388 = vector.extract_strided_slice %267 {offsets = [1, 0], sizes = [1, 256], strides = [1, 1]} : vector<4x256xf32> to vector<1x256xf32>
    %389 = vector.broadcast %387 : vector<4x1xf32> to vector<4x256xf32>
    %390 = vector.broadcast %388 : vector<1x256xf32> to vector<4x256xf32>
    %391 = arith.mulf %389, %390 : vector<4x256xf32>
    %392 = arith.addf %386, %391 : vector<4x256xf32>
    %393 = vector.extract_strided_slice %14 {offsets = [0, 18], sizes = [4, 1], strides = [1, 1]} : vector<4x36xf32> to vector<4x1xf32>
    %394 = vector.extract_strided_slice %267 {offsets = [2, 0], sizes = [1, 256], strides = [1, 1]} : vector<4x256xf32> to vector<1x256xf32>
    %395 = vector.broadcast %393 : vector<4x1xf32> to vector<4x256xf32>
    %396 = vector.broadcast %394 : vector<1x256xf32> to vector<4x256xf32>
    %397 = arith.mulf %395, %396 : vector<4x256xf32>
    %398 = arith.addf %392, %397 : vector<4x256xf32>
    %399 = vector.extract_strided_slice %14 {offsets = [0, 19], sizes = [4, 1], strides = [1, 1]} : vector<4x36xf32> to vector<4x1xf32>
    %400 = vector.extract_strided_slice %267 {offsets = [3, 0], sizes = [1, 256], strides = [1, 1]} : vector<4x256xf32> to vector<1x256xf32>
    %401 = vector.broadcast %399 : vector<4x1xf32> to vector<4x256xf32>
    %402 = vector.broadcast %400 : vector<1x256xf32> to vector<4x256xf32>
    %403 = arith.mulf %401, %402 : vector<4x256xf32>
    %404 = arith.addf %398, %403 : vector<4x256xf32>
    %405 = vector.extract_strided_slice %14 {offsets = [0, 20], sizes = [4, 1], strides = [1, 1]} : vector<4x36xf32> to vector<4x1xf32>
    %406 = vector.extract_strided_slice %279 {offsets = [0, 0], sizes = [1, 256], strides = [1, 1]} : vector<4x256xf32> to vector<1x256xf32>
    %407 = vector.broadcast %405 : vector<4x1xf32> to vector<4x256xf32>
    %408 = vector.broadcast %406 : vector<1x256xf32> to vector<4x256xf32>
    %409 = arith.mulf %407, %408 : vector<4x256xf32>
    %410 = arith.addf %404, %409 : vector<4x256xf32>
    %411 = vector.extract_strided_slice %14 {offsets = [0, 21], sizes = [4, 1], strides = [1, 1]} : vector<4x36xf32> to vector<4x1xf32>
    %412 = vector.extract_strided_slice %279 {offsets = [1, 0], sizes = [1, 256], strides = [1, 1]} : vector<4x256xf32> to vector<1x256xf32>
    %413 = vector.broadcast %411 : vector<4x1xf32> to vector<4x256xf32>
    %414 = vector.broadcast %412 : vector<1x256xf32> to vector<4x256xf32>
    %415 = arith.mulf %413, %414 : vector<4x256xf32>
    %416 = arith.addf %410, %415 : vector<4x256xf32>
    %417 = vector.extract_strided_slice %14 {offsets = [0, 22], sizes = [4, 1], strides = [1, 1]} : vector<4x36xf32> to vector<4x1xf32>
    %418 = vector.extract_strided_slice %279 {offsets = [2, 0], sizes = [1, 256], strides = [1, 1]} : vector<4x256xf32> to vector<1x256xf32>
    %419 = vector.broadcast %417 : vector<4x1xf32> to vector<4x256xf32>
    %420 = vector.broadcast %418 : vector<1x256xf32> to vector<4x256xf32>
    %421 = arith.mulf %419, %420 : vector<4x256xf32>
    %422 = arith.addf %416, %421 : vector<4x256xf32>
    %423 = vector.extract_strided_slice %14 {offsets = [0, 23], sizes = [4, 1], strides = [1, 1]} : vector<4x36xf32> to vector<4x1xf32>
    %424 = vector.extract_strided_slice %279 {offsets = [3, 0], sizes = [1, 256], strides = [1, 1]} : vector<4x256xf32> to vector<1x256xf32>
    %425 = vector.broadcast %423 : vector<4x1xf32> to vector<4x256xf32>
    %426 = vector.broadcast %424 : vector<1x256xf32> to vector<4x256xf32>
    %427 = arith.mulf %425, %426 : vector<4x256xf32>
    %428 = arith.addf %422, %427 : vector<4x256xf32>
    %429 = vector.extract_strided_slice %14 {offsets = [0, 24], sizes = [4, 1], strides = [1, 1]} : vector<4x36xf32> to vector<4x1xf32>
    %430 = vector.extract_strided_slice %282 {offsets = [0, 0], sizes = [1, 256], strides = [1, 1]} : vector<4x256xf32> to vector<1x256xf32>
    %431 = vector.broadcast %429 : vector<4x1xf32> to vector<4x256xf32>
    %432 = vector.broadcast %430 : vector<1x256xf32> to vector<4x256xf32>
    %433 = arith.mulf %431, %432 : vector<4x256xf32>
    %434 = arith.addf %428, %433 : vector<4x256xf32>
    %435 = vector.extract_strided_slice %14 {offsets = [0, 25], sizes = [4, 1], strides = [1, 1]} : vector<4x36xf32> to vector<4x1xf32>
    %436 = vector.extract_strided_slice %282 {offsets = [1, 0], sizes = [1, 256], strides = [1, 1]} : vector<4x256xf32> to vector<1x256xf32>
    %437 = vector.broadcast %435 : vector<4x1xf32> to vector<4x256xf32>
    %438 = vector.broadcast %436 : vector<1x256xf32> to vector<4x256xf32>
    %439 = arith.mulf %437, %438 : vector<4x256xf32>
    %440 = arith.addf %434, %439 : vector<4x256xf32>
    %441 = vector.extract_strided_slice %14 {offsets = [0, 26], sizes = [4, 1], strides = [1, 1]} : vector<4x36xf32> to vector<4x1xf32>
    %442 = vector.extract_strided_slice %282 {offsets = [2, 0], sizes = [1, 256], strides = [1, 1]} : vector<4x256xf32> to vector<1x256xf32>
    %443 = vector.broadcast %441 : vector<4x1xf32> to vector<4x256xf32>
    %444 = vector.broadcast %442 : vector<1x256xf32> to vector<4x256xf32>
    %445 = arith.mulf %443, %444 : vector<4x256xf32>
    %446 = arith.addf %440, %445 : vector<4x256xf32>
    %447 = vector.extract_strided_slice %14 {offsets = [0, 27], sizes = [4, 1], strides = [1, 1]} : vector<4x36xf32> to vector<4x1xf32>
    %448 = vector.extract_strided_slice %282 {offsets = [3, 0], sizes = [1, 256], strides = [1, 1]} : vector<4x256xf32> to vector<1x256xf32>
    %449 = vector.broadcast %447 : vector<4x1xf32> to vector<4x256xf32>
    %450 = vector.broadcast %448 : vector<1x256xf32> to vector<4x256xf32>
    %451 = arith.mulf %449, %450 : vector<4x256xf32>
    %452 = arith.addf %446, %451 : vector<4x256xf32>
    %453 = vector.extract_strided_slice %14 {offsets = [0, 28], sizes = [4, 1], strides = [1, 1]} : vector<4x36xf32> to vector<4x1xf32>
    %454 = vector.extract_strided_slice %271 {offsets = [0, 0], sizes = [1, 256], strides = [1, 1]} : vector<4x256xf32> to vector<1x256xf32>
    %455 = vector.broadcast %453 : vector<4x1xf32> to vector<4x256xf32>
    %456 = vector.broadcast %454 : vector<1x256xf32> to vector<4x256xf32>
    %457 = arith.mulf %455, %456 : vector<4x256xf32>
    %458 = arith.addf %452, %457 : vector<4x256xf32>
    %459 = vector.extract_strided_slice %14 {offsets = [0, 29], sizes = [4, 1], strides = [1, 1]} : vector<4x36xf32> to vector<4x1xf32>
    %460 = vector.extract_strided_slice %271 {offsets = [1, 0], sizes = [1, 256], strides = [1, 1]} : vector<4x256xf32> to vector<1x256xf32>
    %461 = vector.broadcast %459 : vector<4x1xf32> to vector<4x256xf32>
    %462 = vector.broadcast %460 : vector<1x256xf32> to vector<4x256xf32>
    %463 = arith.mulf %461, %462 : vector<4x256xf32>
    %464 = arith.addf %458, %463 : vector<4x256xf32>
    %465 = vector.extract_strided_slice %14 {offsets = [0, 30], sizes = [4, 1], strides = [1, 1]} : vector<4x36xf32> to vector<4x1xf32>
    %466 = vector.extract_strided_slice %271 {offsets = [2, 0], sizes = [1, 256], strides = [1, 1]} : vector<4x256xf32> to vector<1x256xf32>
    %467 = vector.broadcast %465 : vector<4x1xf32> to vector<4x256xf32>
    %468 = vector.broadcast %466 : vector<1x256xf32> to vector<4x256xf32>
    %469 = arith.mulf %467, %468 : vector<4x256xf32>
    %470 = arith.addf %464, %469 : vector<4x256xf32>
    %471 = vector.extract_strided_slice %14 {offsets = [0, 31], sizes = [4, 1], strides = [1, 1]} : vector<4x36xf32> to vector<4x1xf32>
    %472 = vector.extract_strided_slice %271 {offsets = [3, 0], sizes = [1, 256], strides = [1, 1]} : vector<4x256xf32> to vector<1x256xf32>
    %473 = vector.broadcast %471 : vector<4x1xf32> to vector<4x256xf32>
    %474 = vector.broadcast %472 : vector<1x256xf32> to vector<4x256xf32>
    %475 = arith.mulf %473, %474 : vector<4x256xf32>
    %476 = arith.addf %470, %475 : vector<4x256xf32>
    %477 = vector.extract_strided_slice %14 {offsets = [0, 32], sizes = [4, 1], strides = [1, 1]} : vector<4x36xf32> to vector<4x1xf32>
    %478 = vector.extract_strided_slice %283 {offsets = [0, 0], sizes = [1, 256], strides = [1, 1]} : vector<4x256xf32> to vector<1x256xf32>
    %479 = vector.broadcast %477 : vector<4x1xf32> to vector<4x256xf32>
    %480 = vector.broadcast %478 : vector<1x256xf32> to vector<4x256xf32>
    %481 = arith.mulf %479, %480 : vector<4x256xf32>
    %482 = arith.addf %476, %481 : vector<4x256xf32>
    %483 = vector.extract_strided_slice %14 {offsets = [0, 33], sizes = [4, 1], strides = [1, 1]} : vector<4x36xf32> to vector<4x1xf32>
    %484 = vector.extract_strided_slice %283 {offsets = [1, 0], sizes = [1, 256], strides = [1, 1]} : vector<4x256xf32> to vector<1x256xf32>
    %485 = vector.broadcast %483 : vector<4x1xf32> to vector<4x256xf32>
    %486 = vector.broadcast %484 : vector<1x256xf32> to vector<4x256xf32>
    %487 = arith.mulf %485, %486 : vector<4x256xf32>
    %488 = arith.addf %482, %487 : vector<4x256xf32>
    %489 = vector.extract_strided_slice %14 {offsets = [0, 34], sizes = [4, 1], strides = [1, 1]} : vector<4x36xf32> to vector<4x1xf32>
    %490 = vector.extract_strided_slice %283 {offsets = [2, 0], sizes = [1, 256], strides = [1, 1]} : vector<4x256xf32> to vector<1x256xf32>
    %491 = vector.broadcast %489 : vector<4x1xf32> to vector<4x256xf32>
    %492 = vector.broadcast %490 : vector<1x256xf32> to vector<4x256xf32>
    %493 = arith.mulf %491, %492 : vector<4x256xf32>
    %494 = arith.addf %488, %493 : vector<4x256xf32>
    %495 = vector.extract_strided_slice %14 {offsets = [0, 35], sizes = [4, 1], strides = [1, 1]} : vector<4x36xf32> to vector<4x1xf32>
    %496 = vector.extract_strided_slice %283 {offsets = [3, 0], sizes = [1, 256], strides = [1, 1]} : vector<4x256xf32> to vector<1x256xf32>
    %497 = vector.broadcast %495 : vector<4x1xf32> to vector<4x256xf32>
    %498 = vector.broadcast %496 : vector<1x256xf32> to vector<4x256xf32>
    %499 = arith.mulf %497, %498 : vector<4x256xf32>
    %500 = arith.addf %494, %499 : vector<4x256xf32>
    %cst_28 = arith.constant dense<0.000000e+00> : vector<4xf32>
    %501 = vector.multi_reduction <add>, %500, %cst_28 [1] : vector<4x256xf32> to vector<4xf32>
    %502 = vector.shape_cast %501 : vector<4xf32> to vector<4x1xf32>
    %cst_29 = arith.constant 2.560000e+02 : f32
    %503 = vector.broadcast %cst_29 : f32 to vector<4x1xf32>
    %504 = arith.divf %502, %503 : vector<4x1xf32>
    %505 = arith.mulf %500, %500 : vector<4x256xf32>
    %cst_30 = arith.constant dense<0.000000e+00> : vector<4xf32>
    %506 = vector.multi_reduction <add>, %505, %cst_30 [1] : vector<4x256xf32> to vector<4xf32>
    %507 = vector.shape_cast %506 : vector<4xf32> to vector<4x1xf32>
    %cst_31 = arith.constant 2.560000e+02 : f32
    %508 = vector.broadcast %cst_31 : f32 to vector<4x1xf32>
    %509 = arith.divf %507, %508 : vector<4x1xf32>
    %510 = vector.broadcast %504 : vector<4x1xf32> to vector<4x256xf32>
    %511 = arith.subf %500, %510 : vector<4x256xf32>
    %512 = arith.mulf %504, %504 : vector<4x1xf32>
    %513 = arith.subf %509, %512 : vector<4x1xf32>
    %cst_32 = arith.constant 9.99999974E-6 : f32
    %514 = vector.broadcast %cst_32 : f32 to vector<4x1xf32>
    %515 = arith.addf %513, %514 : vector<4x1xf32>
    %516 = math.rsqrt %515 : vector<4x1xf32>
    %517 = vector.broadcast %516 : vector<4x1xf32> to vector<4x256xf32>
    %518 = arith.mulf %511, %517 : vector<4x256xf32>
    %519 = arith.addf %1, %518 : vector<4x256xf32>
    %c0_33 = arith.constant 0 : index
    %c0_34 = arith.constant 0 : index
    %c0_35 = arith.constant 0 : index
    %520 = vector.load %arg4[%c0_33, %c0_34, %c0_35] : memref<1x4x256xf32, #tpu.memory_space<vmem>>, vector<1x4x256xf32>
    %521 = vector.shape_cast %520 : vector<1x4x256xf32> to vector<4x256xf32>
    %522 = vector.shape_cast %519 : vector<4x256xf32> to vector<1x4x256xf32>
    tpu.vector_store %arg4[%c0_33, %c0_34, %c0_35], %522 {strides = array<i32>} : memref<1x4x256xf32, #tpu.memory_space<vmem>>, vector<1x4x256xf32>,
    return
  }
  func.func @transform_0(%arg0: i32) -> (i32, i32, i32) {
    %c0_i32 = arith.constant 0 : i32
    %c0_i32_0 = arith.constant 0 : i32
    %c0_i32_1 = arith.constant 0 : i32
    return %arg0, %c0_i32, %c0_i32_0 : i32, i32, i32
  }
  func.func @transform_1(%arg0: i32) -> (i32, i32) {
    %c0_i32 = arith.constant 0 : i32
    %c0_i32_0 = arith.constant 0 : i32
    %c0_i32_1 = arith.constant 0 : i32
    return %c0_i32, %c0_i32_0 : i32, i32
  }
  func.func @transform_2(%arg0: i32) -> (i32, i32) {
    %c0_i32 = arith.constant 0 : i32
    %c0_i32_0 = arith.constant 0 : i32
    %c0_i32_1 = arith.constant 0 : i32
    return %c0_i32, %c0_i32_0 : i32, i32
  }
  func.func @transform_3(%arg0: i32) -> (i32, i32, i32) {
    %c0_i32 = arith.constant 0 : i32
    %c0_i32_0 = arith.constant 0 : i32
    %c0_i32_1 = arith.constant 0 : i32
    return %arg0, %c0_i32, %c0_i32_0 : i32, i32, i32
  }
}

</mosaic_0001>

<bundles_post_ra>
// kernel: tpu_custom_call.1
= control target key start
LH: loop header
LB: loop body
LE: loop exit
PB: predicated region body
PF: predicated region fallthrough
CT: control target
= control target key end

     0   :  { %8 = vsyncpa [#allocation3], 0  ;;  %s3058_s0 = inlined_call_operand.hbm [shape: f32[2,4,256], index: 0, kind: input, shape index: {}]   ;;  %s3059_s1 = inlined_call_operand.hbm [shape: f32[4,36], index: 1, kind: input, shape index: {}]   ;;  %s3060_s2 = inlined_call_operand.hbm [shape: f32[4,36], index: 2, kind: input, shape index: {}]   ;;  %s3061_s3 = inlined_call_operand.hbm [shape: f32[2,4,256], index: 3, kind: output, shape index: {}]  }
   0x1   :  { %10 = vsyncpa [#allocation3 + $0x1], 0 }
   0x2   :  { %11 = vsyncpa [#allocation6], 0 }
   0x3   :  { %12 = vsyncpa [#allocation4], 0 }
   0x4   :  { %14 = vsyncpa [#allocation4 + $0x1], 0  ;;  %s2133_s12 = smov 0   ;;  %s2135_s13 = smov 0  }
   0x5   :  { %s2137_s14 = smov 0   ;;  %s2139_s15 = smov 0  }
   0x6 LB: > { %s2154_s16 = sadd.s32 4294967295, %s2067_s15   ;;  %s1714_s17 = sadd.s32 4294967294, %s2067_s15   ;;  %s2067_s15 = sphi %s2139_s15, %s3141_s15   ;;  %s2063_s14 = sphi %s2137_s14, %s3140_s14   ;;  %s2059_s13 = sphi %s2135_s13, %s3139_s13   ;;  %s2055_s12 = sphi %s2133_s12, %s3138_s12  }
   0x7   : > { %p40_p0 = scmp.ne.s32.totalorder %s2059_s13, %s2055_s12  ;;  %p3062_p1 = scmp.eq.s32.totalorder %s2154_s16, 0 }
   0x8   : > { %p112_p3 = scmp.eq.s32.totalorder %s1714_s17, 1  ;;  %p1715_p5 = scmp.ge.s32.totalorder %s2067_s15, 1 }
   0x9   : > { %p2163_p4 = por %p3062_p1, %p40_p0  ;;  %p119_p7 = scmp.lt.s32.totalorder %s2067_s15, 3 }
   0xa   : > { %p2168_p6 = por %p112_p3, %p40_p0  ;;  %s2069_s21 = smov [#allocation5]  }
   0xb   : > { %s3091_s18 = scalar_select %p2163_p4, 1, 0 }
   0xc   : > { %s3092_s19 = scalar_select %p2168_p6, 1, 0 }
   0xd   : > { %p2173_p8 = pnand %p1715_p5, %p119_p7  ;;  %s132_s22 = sshll.u32 %s2069_s21, 4  ;;  %s133_s22 = int_to_ptr.vmem [resolvable:$true] %s132_s22 }
   0xe   : > { %s2070_s23 = smov [#allocation7]   ;;  %s2187_s26 = sadd.s32 1, %s2067_s15  }
   0xf   : > { %s3093_s20 = scalar_select %p2173_p8, 1, 0 }
  0x10   : > { %p1746_p10 = pneg %p2173_p8  ;;  %s143_s24 = sshll.u32 %s2070_s23, 4  ;;  %s144_s24 = int_to_ptr.vmem [resolvable:$true] %s143_s24 }
  0x11   : > { %s24_s27 = ssub.s32 %s2067_s15, %s2187_s26  ;;  %s1930_s28 = scalar_lea.vmem %s133_s22, 64 }
  0x12   : > { %p2182_p11 = pnand %p1746_p10, %p3062_p1  ;;  %p1931_p13 = scmp.ne.s32.totalorder %s133_s22, %s1930_s28 }
  0x13   : > { %p1938_p5 = scmp.lt.s32.totalorder %s133_s22, %s133_s22  ;;  %p1939_p7 = scmp.lt.s32.totalorder %s1930_s28, %s1930_s28 }
  0x14   : > { %p1921_p12 = pneg %p2182_p11 }
  0x15   : > { %p1940_p10 = por %p1939_p7, %p1938_p5 }
  0x16   : > { %p1933_p0 = pnand %p1931_p13, %p1921_p12 }
  0x18   : > { %p1934_p3 = pneg %p1933_p0 }
  0x1a   : > { %p1941_p9 = pnand %p1940_p10, %p1934_p3 }
  0x1c   : > { %1944 = shalt.err (!%p1941_p9)
}
  0x1d   : > { %1749 = dma.hbm_to_vmem [thread:$0]  (!%p2182_p11), %s3059_s1, 64, %s133_s22, [#allocation6]  }
  0x1e   : > { %s1956_s4 = scalar_lea.vmem %s144_s24, 64  ;;  %p1964_p13 = scmp.lt.s32.totalorder %s144_s24, %s144_s24 }
  0x1f   : > { %p1957_p1 = scmp.ne.s32.totalorder %s144_s24, %s1956_s4  ;;  %p1965_p0 = scmp.lt.s32.totalorder %s1956_s4, %s1956_s4 }
  0x21   : > { %p1959_p2 = pnand %p1957_p1, %p1921_p12  ;;  %p1966_p4 = por %p1965_p0, %p1964_p13 }
  0x23   : > { %p1960_p6 = pneg %p1959_p2 }
  0x25   : > { %p1967_p8 = pnand %p1966_p4, %p1960_p6 }
  0x27   : > { %1970 = shalt.err (!%p1967_p8)
}
  0x28   : > { %1752 = dma.hbm_to_vmem [thread:$0]  (!%p2182_p11), %s3060_s2, 64, %s144_s24, [#allocation6]  }
  0x29   : > { %p25_p1 = scmp.eq.s32.totalorder %s24_s27, 0  ;;  %s27_s7 = sadd.s32 1, %s2063_s14 }
  0x2a   : > { %p34_p2 = scmp.ne.s32.totalorder %s2063_s14, %s2059_s13  ;;  %p35_p4 = scmp.eq.s32.totalorder %s2067_s15, 0 }
  0x2b   : > { %s2214_s8 = scalar_select %p25_p1, %s2063_s14, %s27_s7  }
  0x2c   : > { %p36_p6 = por %p35_p4, %p34_p2  ;;  %p3095_p8 = scmp.eq.s32.totalorder %s2154_s16, 1 }
  0x2d   : > { %p1763_p12 = scmp.lt.s32.totalorder %s2067_s15, 2  ;;  %s154_s10 = sand.u32 1, %s2063_s14  }
  0x2e   : > { %p2218_p9 = por %p3095_p8, %p34_p2  ;;  %s1719_s11 = sshll.u32 %s154_s10, 3 }
  0x2f   : > { %s1732_s17 = sshll.u32 %s2067_s15, 7  ;;  %s158_s24 = scalar_lea.vmem [#allocation2], %s1719_s11 }
  0x30   : > { %s3096_s9 = scalar_select %p2218_p9, 1, 0 }
  0x31   : > { %s2228_s23 = scalar_lea.hbm %s3058_s0, %s1732_s17  ;;  %s166_s25 = sshll.u32 %s158_s24, 4  ;;  %s167_s25 = int_to_ptr.vmem [resolvable:$true] %s166_s25 }
  0x32   : > { %p2230_p11 = pnand %p1763_p12, %p36_p6  ;;  %s155_s28 = scalar_lea.sflag [#allocation3], %s154_s10 }
  0x33   : > { %s1971_s29 = scalar_lea.hbm %s2228_s23, 128  ;;  %s1976_s5 = scalar_lea.hbm %s3058_s0, 256 }
  0x34   : > { %p1972_p3 = scmp.ne.s32.totalorder %s2228_s23, %s1971_s29  ;;  %p1973_p5 = pneg %p2230_p11 }
  0x35   : > { %p1977_p13 = scmp.lt.s32.totalorder %s2228_s23, %s3058_s0  ;;  %p1978_p0 = scmp.lt.s32.totalorder %s1976_s5, %s1971_s29 }
  0x36   : > { %p1974_p7 = pnand %p1973_p5, %p1972_p3 }
  0x37   : > { %p1979_p1 = por %p1978_p0, %p1977_p13 }
  0x38   : > { %p1975_p10 = pneg %p1974_p7 }
  0x3a   : > { %p1980_p2 = pnand %p1979_p1, %p1975_p10 }
  0x3c   : > { %1983 = shalt.err (!%p1980_p2)
}
  0x3d   : > { %s1984_s11 = scalar_lea.vmem %s167_s25, 128  ;;  %s2071_s10 = smov [#allocation2]  }
  0x3e   : > { %p1985_p4 = scmp.ne.s32.totalorder %s167_s25, %s1984_s11  ;;  %s1989_s17 = sshll.u32 %s2071_s10, 4  ;;  %s1990_s17 = int_to_ptr.vmem [resolvable:$false] %s1989_s17 }
  0x3f   : > { %s1991_s21 = scalar_lea.vmem %s1990_s17, 256  ;;  %p1992_p12 = scmp.lt.s32.totalorder %s167_s25, %s1990_s17 }
  0x40   : > { %p1987_p6 = pnand %p1985_p4, %p1973_p5  ;;  %p1993_p3 = scmp.lt.s32.totalorder %s1991_s21, %s1984_s11 }
  0x42   : > { %p1988_p8 = pneg %p1987_p6  ;;  %p1994_p7 = por %p1993_p3, %p1992_p12 }
  0x44   : > { %p1995_p9 = pnand %p1994_p7, %p1988_p8 }
  0x46   : > { %1998 = shalt.err (!%p1995_p9)
}
  0x47   : > { %1756 = dma.hbm_to_vmem [thread:$0]  (!%p2230_p11), %s2228_s23, 128, %s167_s25, %s155_s28  }
  0x48   : > { %p3098_p10 = scmp.ne.s32.totalorder %s3093_s20, 0 }
  0x49   : > { %s2251_s22 = sand.u32 (!%p3098_p10), 1, %s2059_s13   ;;  %p3099_p9 = scmp.ne.s32.totalorder (!%p3098_p10), %s3091_s18, 0 }
  0x4a   : > { %175 = sbr.rel (%p3098_p10) target bundleno = 1107 (0x453), region = 32  ;;  %s1723_s24 = sshll.u32 (!%p3098_p10), %s2251_s22, 3 }
  0x4b   : > { %s178_s29 = scalar_lea.sflag (!%p3098_p10), [#allocation3], %s2251_s22  ;;  %s2257_s30 = scalar_lea.vmem (!%p3098_p10), [#allocation2], %s1723_s24 }
  0x4f   : > { %2042 = dma.done.wait (%p3099_p9), %s178_s29, 128  }
  0x50   : > { %2044 = vsyncadd (%p3099_p9), %s178_s29, 4294967168  ;;  %p3100_p11 = scmp.eq.s32.totalorder %s2154_s16, 0 }
  0x52   : > { %2046 = dma.done.wait (%p3100_p11), [#allocation6], 128   ;;  %p3101_p5 = pmov %p3100_p11 }
  0x53   : > { %v2072_v0 = vmov 1   ;;  %v2073_v1 = vmov 0   ;;  %v2270_v2 = vld [vmem:[%s2257_s30] sm:$0xff]  ;;  %s2074_s20 = smov 16   ;;  %s2075_s18 = smov 112   ;;  %v2076_v5 = vmov 2   ;;  %v213_v18 = vlaneseq }
  0x54   : > { %2048 = vsyncadd (%p3101_p5), [#allocation6], 4294967168  ;;  %1842 = vset.pattern.permute.xlu1 %v2072_v0  ;;  %1841 = vset.pattern.permute.xlu0 %v2073_v1  ;;  %v229_v3 = vcombine.high %v2270_v2, %v2270_v2  ;;  %v2280_v4 = vld [vmem:[#allocation5] sm:$0xf]  ;;  %v2077_v6 = vmov 3   ;;  %v2078_v7 = vmov 4  }
  0x55   : > { %238 = vrot.lane.b32.xlu1 %v2270_v2, %s2074_s20  ;;  %231 = vrot.lane.b32.xlu0 %v2270_v2, %s2075_s18  ;;  %v2079_v8 = vmov 6   ;;  %v2080_v9 = vmov 5   ;;  %v2081_v10 = vmov 9   ;;  %v2082_v11 = vmov 7   ;;  %s2085_s23 = smov 1   ;;  %s2089_s25 = smov 127  }
  0x56   : > { %v3088_v12 = vmov 12   ;;  %v2084_v13 = vmov 8   ;;  %v3087_v14 = vmov 13   ;;  %v3089_v15 = vmov 10   ;;  %s1733_s27 = sshll.u32 %s2154_s16, 7  ;;  %s211_s28 = scalar_lea.vmem [#allocation8], %s1723_s24 }
  0x57   : > { %v2088_v16 = vmov 11   ;;  %v3090_v17 = vmov 14   ;;  %v2315_v19 = vand.u32 127, %v213_v18  ;;  %v3082_v28 = vmov 16   ;;  %s1625_s4 = sshll.u32 %s211_s28, 4  ;;  %s1623_s7 = scalar_lea.hbm %s3061_s3, %s1733_s27  ;;  %s1626_s4 = int_to_ptr.vmem [resolvable:$true] %s1625_s4 }
  0x58   : > { %v3084_v29 = vmov 15   ;;  %v3079_v30 = vmov 19   ;;  %v3086_v31 = vmov 17   ;;  %v3076_v32 = vmov 22   ;;  %s1611_s11 = scalar_lea.sflag [#allocation4], %s2251_s22  ;;  %s1999_s10 = scalar_lea.vmem %s1626_s4, 128 }
  0x59   : > { %240 = vrot.lane.b32.xlu1 %v229_v3, %s2074_s20  ;;  %233 = vrot.lane.b32.xlu0 %v229_v3, %s2075_s18  ;;  %vm216_vm0 = vcmp.lt.s32.totalorder %v2315_v19, 16  ;;  %vm235_vm1 = vcmp.lt.s32.totalorder %v2315_v19, 112  ;;  %v3080_v33 = vmov 18   ;;  %v3085_v34 = vmov 20   ;;  %p2000_p13 = scmp.ne.s32.totalorder %s1626_s4, %s1999_s10  ;;  %p3135_p0 = scmp.ne.s32.totalorder %s3096_s9, 0 }
  0x5a   : > { %v3072_v35 = vmov 25   ;;  %v3078_v36 = vmov 21   ;;  %v3083_v37 = vmov 23   ;;  %v3070_v38 = vmov 28   ;;  %s2112_s17 = smov [#allocation8]  }
  0x5b   : > { %v3074_v39 = vmov 24   ;;  %v3068_v40 = vmov 31   ;;  %v2374_v41 = vadd.s32 128, %v2315_v19  ;;  %v3081_v42 = vmov 26   ;;  %p2001_p1 = pnand %p2000_p13, %p3135_p0  ;;  %s2003_s16 = sshll.u32 %s2112_s17, 4  ;;  %s2004_s16 = int_to_ptr.vmem [resolvable:$false] %s2003_s16 }
  0x5c   : > { %v3066_v44 = vmov 34   ;;  %v3071_v47 = vmov 27   ;;  %v3077_v50 = vmov 29   ;;  %v3069_v51 = vmov 30   ;;  %s2005_s21 = scalar_lea.vmem %s2004_s16, 256  ;;  %p2006_p4 = scmp.lt.s32.totalorder %s1626_s4, %s2004_s16 }
  0x5d   : > { %316 = vperm.xlu1 %1842, %v2280_v4   ;;  %300 = vperm.xlu0 %1841, %v2280_v4   ;;  %vm219_vm2 = vcmp.ge.s32.totalorder %v2374_v41, 240  ;;  %v3075_v53 = vmov 32   ;;  %v3067_v55 = vmov 33   ;;  %v3073_v58 = vmov 35   ;;  %p2002_p2 = pneg %p2001_p1  ;;  %p2007_p6 = scmp.lt.s32.totalorder %s2005_s21, %s1999_s10 }
  0x5e   : > { %vm252_vm4 = vcmp.lt.s32.totalorder %v2315_v19, 127  ;;  %vm259_vm6 = vcmp.lt.s32.totalorder %v2315_v19, 1  ;;  %vm915_vm9 = vcmask 1043456  }
  0x5f   : > { %p2008_p8 = por %p2007_p6, %p2006_p4 }
  0x61   : > { %1843 = vset.pattern.permute.xlu1 %v2076_v5  ;;  %1844 = vset.pattern.permute.xlu0 %v2077_v6  ;;  %p2009_p12 = pnand %p2008_p8, %p2002_p2 }
  0x62   : > { %332 = vperm.xlu1 %1843, %v2280_v4   ;;  %348 = vperm.xlu0 %1844, %v2280_v4  }
  0x66   : > { %1845 = vset.pattern.permute.xlu1 %v2078_v7  ;;  %1847 = vset.pattern.permute.xlu0 %v2079_v8 }
  0x67   : > { %364 = vperm.xlu1 %1845, %v2280_v4   ;;  %396 = vperm.xlu0 %1847, %v2280_v4  }
  0x6b   : > { %1846 = vset.pattern.permute.xlu1 %v2080_v9  ;;  %1850 = vset.pattern.permute.xlu0 %v2081_v10 }
  0x6c   : > { %380 = vperm.xlu1 %1846, %v2280_v4   ;;  %444 = vperm.xlu0 %1850, %v2280_v4  }
  0x70   : > { %1848 = vset.pattern.permute.xlu1 %v2082_v11  ;;  %1853 = vset.pattern.permute.xlu0 %v3088_v12 }
  0x71   : > { %412 = vperm.xlu1 %1848, %v2280_v4   ;;  %492 = vperm.xlu0 %1853, %v2280_v4  }
  0x75   : > { %1849 = vset.pattern.permute.xlu1 %v2084_v13  ;;  %272 = vrot.lane.b32.xlu0 %v2270_v2, %s2085_s23 }
  0x76   : > { %428 = vperm.xlu1 %1849, %v2280_v4   ;;  %1854 = vset.pattern.permute.xlu0 %v3087_v14 }
  0x7a   : > { %1851 = vset.pattern.permute.xlu1 %v3089_v15 }
  0x7b   : > { %460 = vperm.xlu1 %1851, %v2280_v4  }
  0x7f   : > { %1852 = vset.pattern.permute.xlu1 %v2088_v16 }
  0x80   : > { %476 = vperm.xlu1 %1852, %v2280_v4  }
  0x84   : > { %266 = vrot.lane.b32.xlu1 %v2270_v2, %s2089_s25 }
  0x85   : > { %1855 = vset.pattern.permute.xlu1 %v3090_v17 }
  0x88   : > { %268 = vrot.lane.b32.xlu1 %v229_v3, %s2089_s25 }
  0x8c   : > { %274 = vrot.lane.b32.xlu1 %v229_v3, %s2085_s23 }
  0xc7   : > { %v239_v20 = vpop.permute.xlu1 %238  ;;  %v232_v21 = vpop.permute.xlu0 %231 }
  0xcb   : > { %v241_v22 = vpop.permute.xlu1 %240  ;;  %v234_v23 = vpop.permute.xlu0 %233 }
  0xcc   : > { %v2321_v24 = vsel %vm216_vm0, %v239_v20, %v241_v22  ;;  %v243_v25 = vsel %vm216_vm0, %v241_v22, %v239_v20  ;;  %v2327_v26 = vsel %vm235_vm1, %v232_v21, %v234_v23  ;;  %v237_v43 = vsel %vm235_vm1, %v234_v23, %v232_v21 }
  0xcd   : > { %250 = vrot.lane.b32.xlu0 %v2321_v24, %s2089_s25  ;;  %v2334_v27 = vsel %vm216_vm0, %v2327_v26, %v243_v25  ;;  %v2387_v45 = vsel %vm219_vm2, %v2321_v24, %v237_v43  ;;  %v2438_v22 = vshrl.u32 %v213_v18, 7  ;;  %v221_v23 = vand.u32 15, %v2374_v41 }
  0xce   : > { %248 = vrot.lane.b32.xlu1 %v2334_v27, %s2089_s25  ;;  %v220_v25 = vand.u32 15, %v2315_v19  ;;  %v3122_v41 = vmov 21  }
  0xcf   : > { %vm2448_vm3 = vcmp.eq.s32.totalorder %v221_v23, 0  ;;  %vm2486_vm7 = vcmp.eq.s32.totalorder %v221_v23, 15 }
  0xd0   : > { %vm2453_vm5 = vcmp.eq.s32.totalorder %v220_v25, 0  ;;  %vm2490_vm8 = vcmp.eq.s32.totalorder %v220_v25, 15 }
  0xd1   : > { %257 = vrot.lane.b32.xlu0 %v2321_v24, %s2085_s23 }
  0xd2   : > { %255 = vrot.lane.b32.xlu1 %v2334_v27, %s2085_s23 }
  0xd5   : > { %508 = vperm.xlu0 %1854, %v2280_v4  }
  0xd6   : > { %524 = vperm.xlu1 %1855, %v2280_v4  }
  0xd8   : > { %v2389_v46 = vpop.permute.xlu1 %316  ;;  %v301_v57 = vpop.permute.xlu0 %300 }
  0xd9   : > { %1857 = vset.pattern.permute.xlu0 %v3082_v28 }
  0xda   : > { %556 = vperm.xlu0 %1857, %v2280_v4   ;;  %1856 = vset.pattern.permute.xlu1 %v3084_v29 }
  0xdb   : > { %540 = vperm.xlu1 %1856, %v2280_v4  }
  0xdd   : > { %v2397_v48 = vpop.permute.xlu1 %332  ;;  %v349_v60 = vpop.permute.xlu0 %348 }
  0xde   : > { %1860 = vset.pattern.permute.xlu0 %v3079_v30 }
  0xdf   : > { %634 = vperm.xlu0 %1860, %v2280_v4   ;;  %1858 = vset.pattern.permute.xlu1 %v3086_v31 }
  0xe0   : > { %582 = vperm.xlu1 %1858, %v2280_v4  }
  0xe2   : > { %v2400_v49 = vpop.permute.xlu1 %364  ;;  %v2423_v62 = vpop.permute.xlu0 %396 }
  0xe3   : > { %1863 = vset.pattern.permute.xlu0 %v3076_v32  ;;  %v2470_v32 = vsub.s32 3, %v2438_v22 }
  0xe4   : > { %692 = vperm.xlu0 %1863, %v2280_v4   ;;  %1859 = vset.pattern.permute.xlu1 %v3080_v33 }
  0xe5   : > { %608 = vperm.xlu1 %1859, %v2280_v4  }
  0xe7   : > { %v2405_v52 = vpop.permute.xlu1 %380  ;;  %v2425_v63 = vpop.permute.xlu0 %444 }
  0xe8   : > { %282 = vrot.lane.b32.xlu0 %v2327_v26, %s2089_s25 }
  0xe9   : > { %1861 = vset.pattern.permute.xlu1 %v3085_v34  ;;  %1866 = vset.pattern.permute.xlu0 %v3072_v35 }
  0xea   : > { %660 = vperm.xlu1 %1861, %v2280_v4  }
  0xec   : > { %288 = vrot.lane.b32.xlu0 %v2327_v26, %s2085_s23  ;;  %v2410_v54 = vpop.permute.xlu1 %412  ;;  %v2429_v3 = vpop.permute.xlu0 %492 }
  0xee   : > { %1862 = vset.pattern.permute.xlu1 %v3078_v36 }
  0xef   : > { %676 = vperm.xlu1 %1862, %v2280_v4  }
  0xf0   : > { %740 = vperm.xlu0 %1866, %v2280_v4   ;;  %v2433_v21 = vpop.permute.xlu0 %272 }
  0xf1   : > { %v2414_v56 = vpop.permute.xlu1 %428 }
  0xf3   : > { %1864 = vset.pattern.permute.xlu1 %v3083_v37 }
  0xf4   : > { %1869 = vset.pattern.permute.xlu0 %v3070_v38  ;;  %708 = vperm.xlu1 %1864, %v2280_v4  }
  0xf5   : > { %788 = vperm.xlu0 %1869, %v2280_v4  }
  0xf6   : > { %v2418_v59 = vpop.permute.xlu1 %460 }
  0xf8   : > { %1865 = vset.pattern.permute.xlu1 %v3074_v39 }
  0xf9   : > { %1872 = vset.pattern.permute.xlu0 %v3068_v40  ;;  %724 = vperm.xlu1 %1865, %v2280_v4  }
  0xfa   : > { %836 = vperm.xlu0 %1872, %v2280_v4  }
  0xfb   : > { %v2421_v61 = vpop.permute.xlu1 %476 }
  0xfd   : > { %1867 = vset.pattern.permute.xlu1 %v3081_v42 }
  0xfe   : > { %756 = vperm.xlu1 %1867, %v2280_v4   ;;  %1875 = vset.pattern.permute.xlu0 %v3066_v44  ;;  %v2443_v44 = vsub.s32 0, %v2438_v22 }
  0xff   : > { %884 = vperm.xlu0 %1875, %v2280_v4  }
 0x102   : > { %284 = vrot.lane.b32.xlu1 %v2387_v45, %s2089_s25 }
 0x103   : > { %1868 = vset.pattern.permute.xlu1 %v3071_v47  ;;  %1878 = vset.pattern.permute.xlu0 %v2072_v0  ;;  %v2427_v0 = vpop.permute.xlu1 %266 }
 0x106   : > { %290 = vrot.lane.b32.xlu1 %v2387_v45, %s2085_s23 }
 0x107   : > { %v2431_v20 = vpop.permute.xlu1 %268 }
 0x10a   : > { %772 = vperm.xlu1 %1868, %v2280_v4  }
 0x10e   : > { %1870 = vset.pattern.permute.xlu1 %v3077_v50 }
 0x10f   : > { %804 = vperm.xlu1 %1870, %v2280_v4  }
 0x113   : > { %1871 = vset.pattern.permute.xlu1 %v3069_v51 }
 0x114   : > { %820 = vperm.xlu1 %1871, %v2280_v4  }
 0x118   : > { %1873 = vset.pattern.permute.xlu1 %v3075_v53  ;;  %v2467_v53 = vsub.s32 2, %v2438_v22 }
 0x119   : > { %852 = vperm.xlu1 %1873, %v2280_v4  }
 0x11a   : > { %v406_v23 = vrot.slane %v2321_v24, %v2467_v53 }
 0x11d   : > { %1874 = vset.pattern.permute.xlu1 %v3067_v55  ;;  %v2446_v55 = vsub.s32 1, %v2438_v22 }
 0x11e   : > { %868 = vperm.xlu1 %1874, %v2280_v4  }
 0x122   : > { %1876 = vset.pattern.permute.xlu1 %v3073_v58 }
 0x123   : > { %900 = vperm.xlu1 %1876, %v2280_v4   ;;  %v2435_v4 = vpop.permute.xlu1 %274 }
 0x127   : > { %1877 = vset.pattern.permute.xlu1 %v2073_v1 }
 0x13f   : > { %v251_v1 = vpop.permute.xlu0 %250 }
 0x140   : > { %v249_v43 = vpop.permute.xlu1 %248 }
 0x141   : > { %v253_v47 = vsel %vm252_vm4, %v249_v43, %v251_v1  ;;  %v254_v35 = vsel %vm252_vm4, %v251_v1, %v249_v43 }
 0x143   : > { %v258_v40 = vpop.permute.xlu0 %257 }
 0x144   : > { %v256_v38 = vpop.permute.xlu1 %255 }
 0x145   : > { %v260_v58 = vsel %vm259_vm6, %v256_v38, %v258_v40  ;;  %v261_v39 = vsel %vm259_vm6, %v258_v40, %v256_v38 }
 0x146   : > { %v262_v50 = vsel %vm2453_vm5, %v253_v47, %v261_v39  ;;  %v263_v36 = vsel %vm2448_vm3, %v254_v35, %v260_v58 }
 0x147   : > { %v306_v1 = vrot.slane %v262_v50, %v2443_v44  ;;  %v310_v43 = vrot.slane %v263_v36, %v2443_v44  ;;  %v322_v30 = vrot.slane %v262_v50, %v2446_v55  ;;  %v326_v38 = vrot.slane %v263_v36, %v2446_v55 }
 0x148   : > { %v338_v40 = vrot.slane %v262_v50, %v2467_v53  ;;  %v342_v33 = vrot.slane %v263_v36, %v2467_v53  ;;  %v354_v42 = vrot.slane %v262_v50, %v2470_v32  ;;  %v358_v28 = vrot.slane %v263_v36, %v2470_v32 }
 0x149   : > { %v311_v37 = vmul.f32 %v306_v1, %v301_v57  ;;  %v312_v29 = vmul.f32 %v310_v43, %v301_v57  ;;  %v327_v34 = vmul.f32 %v322_v30, %v2389_v46  ;;  %v328_v31 = vmul.f32 %v326_v38, %v2389_v46 }
 0x14a   : > { %v343_v50 = vmul.f32 %v338_v40, %v2397_v48  ;;  %v344_v36 = vmul.f32 %v342_v33, %v2397_v48  ;;  %v374_v57 = vrot.slane %v2321_v24, %v2443_v44  ;;  %v370_v30 = vrot.slane %v2334_v27, %v2443_v44 }
 0x14b   : > { %v329_v15 = vadd.f32 %v327_v34, %v311_v37  ;;  %v330_v17 = vadd.f32 %v328_v31, %v312_v29  ;;  %v402_v46 = vrot.slane %v2334_v27, %v2467_v53  ;;  %v359_v34 = vmul.f32 %v354_v42, %v349_v60 }
 0x14c   : > { %v360_v29 = vmul.f32 %v358_v28, %v349_v60  ;;  %v390_v31 = vrot.slane %v2321_v24, %v2446_v55  ;;  %v386_v33 = vrot.slane %v2334_v27, %v2446_v55  ;;  %v422_v37 = vrot.slane %v2321_v24, %v2470_v32 }
 0x14d   : > { %v345_v25 = vadd.f32 %v343_v50, %v329_v15  ;;  %v346_v1 = vadd.f32 %v344_v36, %v330_v17  ;;  %v418_v48 = vrot.slane %v2334_v27, %v2470_v32  ;;  %v375_v43 = vmul.f32 %v370_v30, %v2400_v49 }
 0x14e   : > { %v376_v38 = vmul.f32 %v374_v57, %v2400_v49  ;;  %v407_v28 = vmul.f32 %v402_v46, %v2423_v62  ;;  %v408_v42 = vmul.f32 %v406_v23, %v2423_v62  ;;  %v264_v60 = vsel %vm2490_vm8, %v261_v39, %v253_v47 }
 0x14f   : > { %v361_v15 = vadd.f32 %v359_v34, %v345_v25  ;;  %v362_v17 = vadd.f32 %v360_v29, %v346_v1  ;;  %v265_v40 = vsel %vm2486_vm7, %v260_v58, %v254_v35  ;;  %v391_v24 = vmul.f32 %v386_v33, %v2405_v52 }
 0x150   : > { %v392_v27 = vmul.f32 %v390_v31, %v2405_v52  ;;  %v2528_v49 = vsel %vm252_vm4, %v2427_v0, %v2431_v20  ;;  %v2534_v39 = vsel %vm252_vm4, %v2431_v20, %v2427_v0  ;;  %v2540_v35 = vsel %vm259_vm6, %v2433_v21, %v2435_v4 }
 0x151   : > { %v377_v50 = vadd.f32 %v375_v43, %v361_v15  ;;  %v378_v36 = vadd.f32 %v376_v38, %v362_v17  ;;  %v2522_v30 = vpop.permute.xlu1 %524  ;;  %v2546_v47 = vsel %vm259_vm6, %v2435_v4, %v2433_v21  ;;  %v434_v62 = vrot.slane %v264_v60, %v2443_v44 }
 0x152   : > { %v438_v57 = vrot.slane %v265_v40, %v2443_v44  ;;  %v450_v0 = vrot.slane %v264_v60, %v2446_v55  ;;  %v454_v20 = vrot.slane %v265_v40, %v2446_v55  ;;  %v423_v46 = vmul.f32 %v418_v48, %v2410_v54 }
 0x153   : > { %v393_v52 = vadd.f32 %v391_v24, %v377_v50  ;;  %v394_v58 = vadd.f32 %v392_v27, %v378_v36  ;;  %v424_v23 = vmul.f32 %v422_v37, %v2410_v54  ;;  %v2558_v21 = vsel %vm2453_vm5, %v2528_v49, %v2546_v47 }
 0x154   : > { %v2564_v4 = vsel %vm2448_vm3, %v2534_v39, %v2540_v35  ;;  %v466_v34 = vrot.slane %v264_v60, %v2467_v53  ;;  %v470_v29 = vrot.slane %v265_v40, %v2467_v53  ;;  %v439_v54 = vmul.f32 %v434_v62, %v2414_v56 }
 0x155   : > { %v409_v25 = vadd.f32 %v407_v28, %v393_v52  ;;  %v410_v1 = vadd.f32 %v408_v42, %v394_v58  ;;  %v440_v33 = vmul.f32 %v438_v57, %v2414_v56  ;;  %v455_v43 = vmul.f32 %v450_v0, %v2425_v63 }
 0x156   : > { %v541_v31 = vpop.permute.xlu1 %540  ;;  %v456_v38 = vmul.f32 %v454_v20, %v2425_v63  ;;  %v565_v15 = vsub.s32 4, %v2438_v22  ;;  %v591_v17 = vsub.s32 5, %v2438_v22  ;;  %v482_v28 = vrot.slane %v264_v60, %v2470_v32 }
 0x157   : > { %v425_v37 = vadd.f32 %v423_v46, %v409_v25  ;;  %v426_v48 = vadd.f32 %v424_v23, %v410_v1  ;;  %v486_v42 = vrot.slane %v265_v40, %v2470_v32  ;;  %v498_v50 = vrot.slane %v2558_v21, %v2443_v44 }
 0x158   : > { %v502_v56 = vrot.slane %v2564_v4, %v2443_v44  ;;  %v471_v63 = vmul.f32 %v466_v34, %v2418_v59  ;;  %v472_v58 = vmul.f32 %v470_v29, %v2418_v59  ;;  %v562_v60 = vrot.slane %v2270_v2, %v2443_v44  ;;  %v509_v34 = vpop.permute.xlu0 %508 }
 0x159   : > { %v441_v24 = vadd.f32 %v439_v54, %v425_v37  ;;  %v442_v27 = vadd.f32 %v440_v33, %v426_v48  ;;  %v566_v40 = vrot.slane %v2270_v2, %v565_v15  ;;  %v588_v57 = vrot.slane %v2270_v2, %v2446_v55 }
 0x15a   : > { %v592_v0 = vrot.slane %v2270_v2, %v591_v17  ;;  %v487_v23 = vmul.f32 %v482_v28, %v2421_v61  ;;  %v488_v25 = vmul.f32 %v486_v42, %v2421_v61  ;;  %v514_v59 = vrot.slane %v2558_v21, %v2446_v55 }
 0x15b   : > { %v457_v36 = vadd.f32 %v455_v43, %v441_v24  ;;  %v458_v52 = vadd.f32 %v456_v38, %v442_v27  ;;  %v583_v62 = vpop.permute.xlu1 %582  ;;  %v518_v1 = vrot.slane %v2564_v4, %v2446_v55  ;;  %v643_v29 = vsub.s32 7, %v2438_v22 }
 0x15c   : > { %v617_v54 = vsub.s32 6, %v2438_v22  ;;  %v503_v48 = vmul.f32 %v498_v50, %v2429_v3  ;;  %v504_v43 = vmul.f32 %v502_v56, %v2429_v3  ;;  %v530_v61 = vrot.slane %v2558_v21, %v2467_v53 }
 0x15d   : > { %v473_v20 = vadd.f32 %v471_v63, %v457_v36  ;;  %v474_v46 = vadd.f32 %v472_v58, %v458_v52  ;;  %v534_v38 = vrot.slane %v2564_v4, %v2467_v53  ;;  %v572_v15 = vrot.slane %v562_v60, %v2443_v44 }
 0x15e   : > { %v576_v17 = vrot.slane %v566_v40, %v2443_v44  ;;  %v519_v22 = vmul.f32 %v514_v59, %v509_v34  ;;  %v520_v27 = vmul.f32 %v518_v1, %v509_v34  ;;  %v546_v50 = vrot.slane %v2558_v21, %v2470_v32  ;;  %v557_v40 = vpop.permute.xlu0 %556 }
 0x15f   : > { %v489_v33 = vadd.f32 %v487_v23, %v473_v20  ;;  %v490_v37 = vadd.f32 %v488_v25, %v474_v46  ;;  %v550_v3 = vrot.slane %v2564_v4, %v2470_v32  ;;  %v644_v56 = vrot.slane %v2270_v2, %v643_v29 }
 0x160   : > { %v609_v28 = vpop.permute.xlu1 %608  ;;  %v618_v36 = vrot.slane %v2270_v2, %v617_v54  ;;  %v535_v58 = vmul.f32 %v530_v61, %v2522_v30  ;;  %v536_v60 = vmul.f32 %v534_v38, %v2522_v30  ;;  %v577_v20 = vmul.f32 %v572_v15, %v557_v40 }
 0x161   : > { %v505_v42 = vadd.f32 %v503_v48, %v489_v33  ;;  %v506_v24 = vadd.f32 %v504_v43, %v490_v37  ;;  %v578_v46 = vmul.f32 %v576_v17, %v557_v40  ;;  %v602_v23 = vrot.slane %v592_v0, %v2446_v55 }
 0x162   : > { %v551_v59 = vmul.f32 %v546_v50, %v541_v31  ;;  %v552_v1 = vmul.f32 %v550_v3, %v541_v31  ;;  %v598_v34 = vrot.slane %v588_v57, %v2446_v55  ;;  %v614_v29 = vrot.slane %v2270_v2, %v2467_v53  ;;  %v635_v38 = vpop.permute.xlu0 %634 }
 0x163   : > { %v521_v52 = vadd.f32 %v519_v22, %v505_v42  ;;  %v522_v63 = vadd.f32 %v520_v27, %v506_v24  ;;  %v654_v37 = vrot.slane %v644_v56, %v2470_v32  ;;  %v628_v30 = vrot.slane %v618_v36, %v2467_v53 }
 0x164   : > { %v604_v61 = vmul.f32 %v602_v23, %v583_v62  ;;  %v640_v0 = vrot.slane %v2270_v2, %v2470_v32  ;;  %v624_v31 = vrot.slane %v614_v29, %v2467_v53  ;;  %v603_v57 = vmul.f32 %v598_v34, %v583_v62 }
 0x165   : > { %v537_v25 = vadd.f32 %v535_v58, %v521_v52  ;;  %v538_v21 = vadd.f32 %v536_v60, %v522_v63  ;;  %v661_v4 = vpop.permute.xlu1 %660  ;;  %v656_v42 = vmul.f32 %v654_v37, %v635_v38  ;;  %v630_v24 = vmul.f32 %v628_v30, %v609_v28 }
 0x166   : > { %v650_v27 = vrot.slane %v640_v0, %v2470_v32  ;;  %v629_v3 = vmul.f32 %v624_v31, %v609_v28  ;;  %v280_v2 = vsel %vm2490_vm8, %v2546_v47, %v2528_v49  ;;  %v281_v62 = vsel %vm2486_vm7, %v2540_v35, %v2534_v39  ;;  %v693_v58 = vpop.permute.xlu0 %692 }
 0x167   : > { %v553_v54 = vadd.f32 %v551_v59, %v537_v25  ;;  %v554_v33 = vadd.f32 %v552_v1, %v538_v21  ;;  %v670_v28 = vrot.slane %v281_v62, %v2443_v44  ;;  %v682_v1 = vrot.slane %v280_v2, %v2446_v55 }
 0x168   : > { %v655_v52 = vmul.f32 %v650_v27, %v635_v38  ;;  %v686_v49 = vrot.slane %v281_v62, %v2446_v55  ;;  %v698_v39 = vrot.slane %v280_v2, %v2467_v53  ;;  %v702_v35 = vrot.slane %v281_v62, %v2467_v53 }
 0x169   : > { %v579_v48 = vadd.f32 %v577_v20, %v553_v54  ;;  %v580_v43 = vadd.f32 %v578_v46, %v554_v33  ;;  %v666_v20 = vrot.slane %v280_v2, %v2443_v44  ;;  %v672_v23 = vmul.f32 %v670_v28, %v661_v4 }
 0x16a   : > { %v677_v15 = vpop.permute.xlu1 %676  ;;  %v283_v25 = vpop.permute.xlu0 %282  ;;  %v714_v0 = vrot.slane %v280_v2, %v2470_v32  ;;  %v718_v38 = vrot.slane %v281_v62, %v2470_v32 }
 0x16b   : > { %v606_v17 = vadd.f32 %v604_v61, %v580_v43  ;;  %v605_v22 = vadd.f32 %v603_v57, %v579_v48  ;;  %v671_v46 = vmul.f32 %v666_v20, %v661_v4  ;;  %v687_v34 = vmul.f32 %v682_v1, %v677_v15 }
 0x16c   : > { %v688_v29 = vmul.f32 %v686_v49, %v677_v15  ;;  %v703_v48 = vmul.f32 %v698_v39, %v693_v58  ;;  %v704_v4 = vmul.f32 %v702_v35, %v693_v58 }
 0x16d   : > { %v632_v50 = vadd.f32 %v630_v24, %v606_v17  ;;  %v631_v63 = vadd.f32 %v629_v3, %v605_v22 }
 0x16e   : > { %v289_v30 = vpop.permute.xlu0 %288 }
 0x16f   : > { %v658_v56 = vadd.f32 %v656_v42, %v632_v50  ;;  %v709_v36 = vpop.permute.xlu1 %708  ;;  %v657_v40 = vadd.f32 %v655_v52, %v631_v63 }
 0x170   : > { %v719_v24 = vmul.f32 %v714_v0, %v709_v36  ;;  %v720_v22 = vmul.f32 %v718_v38, %v709_v36  ;;  %v814_v0 = vrot.slane %v2387_v45, %v2446_v55 }
 0x171   : > { %v673_v21 = vadd.f32 %v671_v46, %v657_v40  ;;  %v674_v59 = vadd.f32 %v672_v23, %v658_v56 }
 0x172   : > { %v741_v3 = vpop.permute.xlu0 %740 }
 0x173   : > { %v689_v54 = vadd.f32 %v687_v34, %v673_v21  ;;  %v690_v33 = vadd.f32 %v688_v29, %v674_v59 }
 0x174   : > { %v725_v60 = vpop.permute.xlu1 %724 }
 0x175   : > { %v705_v43 = vadd.f32 %v703_v48, %v689_v54  ;;  %v706_v61 = vadd.f32 %v704_v4, %v690_v33 }
 0x176   : > { %v789_v34 = vpop.permute.xlu0 %788 }
 0x177   : > { %v721_v62 = vadd.f32 %v719_v24, %v705_v43  ;;  %v722_v58 = vadd.f32 %v720_v22, %v706_v61  ;;  %v810_v61 = vrot.slane %v2327_v26, %v2446_v55  ;;  %v826_v22 = vrot.slane %v2327_v26, %v2467_v53 }
 0x179   : > { %v757_v47 = vpop.permute.xlu1 %756 }
 0x17d   : > { %v285_v37 = vpop.permute.xlu1 %284 }
 0x17e   : > { %v286_v15 = vsel %vm252_vm4, %v283_v25, %v285_v37  ;;  %v287_v57 = vsel %vm252_vm4, %v285_v37, %v283_v25  ;;  %v798_v37 = vrot.slane %v2387_v45, %v2443_v44 }
 0x181   : > { %v291_v31 = vpop.permute.xlu1 %290 }
 0x182   : > { %v292_v17 = vsel %vm259_vm6, %v289_v30, %v291_v31  ;;  %v293_v42 = vsel %vm259_vm6, %v291_v31, %v289_v30  ;;  %v800_v31 = vmul.f32 %v798_v37, %v789_v34 }
 0x183   : > { %v294_v27 = vsel %vm2453_vm5, %v286_v15, %v293_v42  ;;  %v295_v50 = vsel %vm2448_vm3, %v287_v57, %v292_v17 }
 0x184   : > { %v730_v56 = vrot.slane %v294_v27, %v2443_v44  ;;  %v734_v52 = vrot.slane %v295_v50, %v2443_v44  ;;  %v746_v63 = vrot.slane %v294_v27, %v2446_v55  ;;  %v750_v2 = vrot.slane %v295_v50, %v2446_v55 }
 0x185   : > { %v773_v40 = vpop.permute.xlu1 %772  ;;  %v762_v28 = vrot.slane %v294_v27, %v2467_v53  ;;  %v766_v46 = vrot.slane %v295_v50, %v2467_v53  ;;  %v778_v23 = vrot.slane %v294_v27, %v2470_v32  ;;  %v782_v25 = vrot.slane %v295_v50, %v2470_v32 }
 0x186   : > { %v735_v20 = vmul.f32 %v730_v56, %v725_v60  ;;  %v736_v36 = vmul.f32 %v734_v52, %v725_v60  ;;  %v751_v1 = vmul.f32 %v746_v63, %v741_v3  ;;  %v752_v49 = vmul.f32 %v750_v2, %v741_v3  ;;  %v837_v3 = vpop.permute.xlu0 %836 }
 0x187   : > { %v767_v35 = vmul.f32 %v762_v28, %v757_v47  ;;  %v768_v54 = vmul.f32 %v766_v46, %v757_v47  ;;  %v794_v60 = vrot.slane %v2327_v26, %v2443_v44  ;;  %v783_v4 = vmul.f32 %v778_v23, %v773_v40 }
 0x188   : > { %v737_v21 = vadd.f32 %v735_v20, %v721_v62  ;;  %v738_v59 = vadd.f32 %v736_v36, %v722_v58  ;;  %v784_v43 = vmul.f32 %v782_v25, %v773_v40  ;;  %v830_v27 = vrot.slane %v2387_v45, %v2467_v53 }
 0x189   : > { %v799_v38 = vmul.f32 %v794_v60, %v789_v34  ;;  %v842_v62 = vrot.slane %v2327_v26, %v2470_v32  ;;  %v846_v58 = vrot.slane %v2387_v45, %v2470_v32  ;;  %v296_v40 = vsel %vm2490_vm8, %v293_v42, %v286_v15 }
 0x18a   : > { %v753_v29 = vadd.f32 %v751_v1, %v737_v21  ;;  %v754_v39 = vadd.f32 %v752_v49, %v738_v59  ;;  %v805_v33 = vpop.permute.xlu1 %804  ;;  %v297_v20 = vsel %vm2486_vm7, %v292_v17, %v287_v57  ;;  %v858_v26 = vrot.slane %v296_v40, %v2443_v44 }
 0x18b   : > { %v815_v63 = vmul.f32 %v810_v61, %v805_v33  ;;  %v816_v2 = vmul.f32 %v814_v0, %v805_v33  ;;  %v847_v25 = vmul.f32 %v842_v62, %v837_v3  ;;  %v848_v21 = vmul.f32 %v846_v58, %v837_v3 }
 0x18c   : > { %v769_v30 = vadd.f32 %v767_v35, %v753_v29  ;;  %v770_v48 = vadd.f32 %v768_v54, %v754_v39  ;;  %v862_v34 = vrot.slane %v297_v20, %v2443_v44  ;;  %v890_v42 = vrot.slane %v296_v40, %v2467_v53  ;;  %v885_v54 = vpop.permute.xlu0 %884 }
 0x18d   : > { %v894_v57 = vrot.slane %v297_v20, %v2467_v53  ;;  %v874_v17 = vrot.slane %v296_v40, %v2446_v55  ;;  %v878_v35 = vrot.slane %v297_v20, %v2446_v55 }
 0x18e   : > { %v785_v47 = vadd.f32 %v783_v4, %v769_v30  ;;  %v786_v24 = vadd.f32 %v784_v43, %v770_v48  ;;  %v895_v4 = vmul.f32 %v890_v42, %v885_v54  ;;  %v2702_v42 = vld [vmem:[#allocation7] sm:$0xf] }
 0x18f   : > { %v821_v50 = vpop.permute.xlu1 %820  ;;  %v896_v43 = vmul.f32 %v894_v57, %v885_v54  ;;  %v3114_v54 = vmov 17  }
 0x190   : > { %v801_v56 = vadd.f32 %v799_v38, %v785_v47  ;;  %v802_v52 = vadd.f32 %v800_v31, %v786_v24  ;;  %v831_v46 = vmul.f32 %v826_v22, %v821_v50  ;;  %v832_v23 = vmul.f32 %v830_v27, %v821_v50 }
 0x191   : > { %v906_v38 = vrot.slane %v296_v40, %v2470_v32  ;;  %v910_v31 = vrot.slane %v297_v20, %v2470_v32 }
 0x192   : > { %v817_v36 = vadd.f32 %v815_v63, %v801_v56  ;;  %v818_v28 = vadd.f32 %v816_v2, %v802_v52 }
 0x194   : > { %v833_v59 = vadd.f32 %v831_v46, %v817_v36  ;;  %v834_v1 = vadd.f32 %v832_v23, %v818_v28  ;;  %v853_v49 = vpop.permute.xlu1 %852 }
 0x195   : > { %v863_v39 = vmul.f32 %v858_v26, %v853_v49  ;;  %v864_v15 = vmul.f32 %v862_v34, %v853_v49 }
 0x196   : > { %v849_v45 = vadd.f32 %v847_v25, %v833_v59  ;;  %v850_v29 = vadd.f32 %v848_v21, %v834_v1 }
 0x198   : > { %v865_v60 = vadd.f32 %v863_v39, %v849_v45  ;;  %v866_v37 = vadd.f32 %v864_v15, %v850_v29 }
 0x199   : > { %v869_v33 = vpop.permute.xlu1 %868 }
 0x19a   : > { %v879_v30 = vmul.f32 %v874_v17, %v869_v33  ;;  %v880_v48 = vmul.f32 %v878_v35, %v869_v33  ;;  %v3115_v33 = vmov 20  }
 0x19c   : > { %v881_v61 = vadd.f32 %v879_v30, %v865_v60  ;;  %v882_v0 = vadd.f32 %v880_v48, %v866_v37  ;;  %v3116_v60 = vmov 15   ;;  %v3117_v37 = vmov 23  }
 0x19d   : > { %v3118_v30 = vmov 16  }
 0x19e   : > { %v901_v47 = vpop.permute.xlu1 %900  ;;  %v897_v24 = vadd.f32 %v895_v4, %v881_v61  ;;  %v898_v22 = vadd.f32 %v896_v43, %v882_v0  ;;  %v3119_v43 = vmov 26   ;;  %v3120_v61 = vmov 18  }
 0x19f   : > { %v911_v27 = vmul.f32 %v906_v38, %v901_v47  ;;  %v912_v50 = vmul.f32 %v910_v31, %v901_v47  ;;  %v3121_v0 = vmov 19   ;;  %v3123_v38 = vmov 29  }
 0x1a0   : > { %v3124_v31 = vmov 22   ;;  %v3125_v47 = vmov 32  }
 0x1a1   : > { %v913_v3 = vadd.f32 %v911_v27, %v897_v24  ;;  %v914_v56 = vadd.f32 %v912_v50, %v898_v22  ;;  %v3126_v24 = vmov 24   ;;  %v3127_v22 = vmov 35  }
 0x1a2   : > { %v3128_v27 = vmov 25  }
 0x1a3   : > { %v916_v52 = vsel %vm915_vm9, %v913_v3, 0.0  ;;  %v917_v63 = vsel %vm915_vm9, %v914_v56, 0.0  ;;  %v923_v2 = vmul.f32 %v913_v3, %v913_v3  ;;  %v924_v62 = vmul.f32 %v914_v56, %v914_v56 }
 0x1a4   : > { %v918_v58 = vadd.f32 %v917_v63, %v916_v52  ;;  %v3130_v52 = vmov 28  }
 0x1a5   : > { %v925_v36 = vsel %vm915_vm9, %v923_v2, 0.0  ;;  %v926_v40 = vsel %vm915_vm9, %v924_v62, 0.0  ;;  %v3131_v2 = vmov 30  }
 0x1a6   : > { %919 = vadd.xlane.f32.xlu1 %v918_v58  ;;  %v927_v20 = vadd.f32 %v926_v40, %v925_v36  ;;  %v3132_v58 = vmov 31   ;;  %v3133_v40 = vmov 33  }
 0x1a8   : > { %928 = vadd.xlane.f32.xlu0 %v927_v20 }
 0x22f   : > { %v920_v28 = vpop.xlane.xlu1 %919 }
 0x230   : > { %v922_v46 = vmul.f32 0.00390625, %v920_v28 }
 0x231   : > { %v929_v23 = vpop.xlane.xlu0 %928 }
 0x232   : > { %v930_v25 = vmul.f32 0.00390625, %v929_v23  ;;  %v933_v21 = vmul.f32 %v922_v46, %v922_v46  ;;  %v931_v49 = vsub.f32 %v913_v3, %v922_v46  ;;  %v932_v26 = vsub.f32 %v914_v56, %v922_v46 }
 0x233   : > { %v3129_v3 = vmov 27   ;;  %v3134_v46 = vmov 34  }
 0x234   : > { %v934_v59 = vsub.f32 %v930_v25, %v933_v21 }
 0x236   : > { %v935_v1 = vadd.f32 1e-05, %v934_v59 }
 0x238   : > { %1914 = vrsqrt.f32 %v935_v1 }
 0x245   : > { %v1915_v34 = vpop.eup %1914 }
 0x246   : > { %v937_v45 = vmul.f32 %v1915_v34, %v931_v49  ;;  %v938_v29 = vmul.f32 %v1915_v34, %v932_v26 }
 0x248   : > { %v2690_v39 = vmax.f32 %v937_v45, 0.0  ;;  %v2692_v15 = vmax.f32 %v938_v29, 0.0 }
 0x24a   : > { %943 = vrot.lane.b32.xlu1 %v2692_v15, %s2075_s18  ;;  %941 = vrot.lane.b32.xlu0 %v2690_v39, %s2075_s18 }
 0x24e   : > { %947 = vrot.lane.b32.xlu1 %v2690_v39, %s2074_s20  ;;  %949 = vrot.lane.b32.xlu0 %v2692_v15, %s2074_s20 }
 0x252   : > { %1007 = vperm.xlu1 %1877, %v2702_v42   ;;  %1023 = vperm.xlu0 %1878, %v2702_v42  }
 0x256   : > { %1880 = vset.pattern.permute.xlu1 %v2077_v6  ;;  %1879 = vset.pattern.permute.xlu0 %v2076_v5  ;;  %v3110_v5 = vmov 14   ;;  %v3111_v6 = vmov 10  }
 0x257   : > { %1055 = vperm.xlu1 %1880, %v2702_v42   ;;  %1039 = vperm.xlu0 %1879, %v2702_v42  }
 0x25b   : > { %1881 = vset.pattern.permute.xlu1 %v2078_v7  ;;  %1882 = vset.pattern.permute.xlu0 %v2080_v9  ;;  %v3112_v7 = vmov 12  }
 0x25c   : > { %1071 = vperm.xlu1 %1881, %v2702_v42   ;;  %1087 = vperm.xlu0 %1882, %v2702_v42  }
 0x260   : > { %1883 = vset.pattern.permute.xlu1 %v2079_v8  ;;  %1885 = vset.pattern.permute.xlu0 %v2084_v13  ;;  %v3113_v8 = vmov 13  }
 0x261   : > { %1103 = vperm.xlu1 %1883, %v2702_v42   ;;  %1135 = vperm.xlu0 %1885, %v2702_v42  }
 0x265   : > { %1884 = vset.pattern.permute.xlu1 %v2082_v11  ;;  %1888 = vset.pattern.permute.xlu0 %v2088_v16 }
 0x266   : > { %1119 = vperm.xlu1 %1884, %v2702_v42   ;;  %1183 = vperm.xlu0 %1888, %v2702_v42  }
 0x26a   : > { %1886 = vset.pattern.permute.xlu1 %v2081_v10  ;;  %975 = vrot.lane.b32.xlu0 %v2692_v15, %s2089_s25 }
 0x26b   : > { %1151 = vperm.xlu1 %1886, %v2702_v42   ;;  %1891 = vset.pattern.permute.xlu0 %v3110_v5 }
 0x26e   : > { %981 = vrot.lane.b32.xlu0 %v2692_v15, %s2085_s23 }
 0x26f   : > { %1887 = vset.pattern.permute.xlu1 %v3111_v6 }
 0x270   : > { %1167 = vperm.xlu1 %1887, %v2702_v42  }
 0x274   : > { %1889 = vset.pattern.permute.xlu1 %v3112_v7 }
 0x275   : > { %1199 = vperm.xlu1 %1889, %v2702_v42  }
 0x279   : > { %973 = vrot.lane.b32.xlu1 %v2690_v39, %s2089_s25 }
 0x27a   : > { %1890 = vset.pattern.permute.xlu1 %v3113_v8 }
 0x27d   : > { %979 = vrot.lane.b32.xlu1 %v2690_v39, %s2085_s23 }
 0x2bc   : > { %v944_v9 = vpop.permute.xlu1 %943  ;;  %v942_v10 = vpop.permute.xlu0 %941 }
 0x2bd   : > { %v2740_v16 = vsel %vm235_vm1, %v942_v10, %v944_v9  ;;  %v946_v48 = vsel %vm235_vm1, %v944_v9, %v942_v10 }
 0x2c0   : > { %v948_v11 = vpop.permute.xlu1 %947  ;;  %v950_v13 = vpop.permute.xlu0 %949 }
 0x2c1   : > { %v2744_v57 = vsel %vm216_vm0, %v948_v11, %v950_v13  ;;  %v952_v17 = vsel %vm216_vm0, %v950_v13, %v948_v11 }
 0x2c2   : > { %v2751_v35 = vsel %vm216_vm0, %v2740_v16, %v952_v17  ;;  %959 = vrot.lane.b32.xlu1 %v2744_v57, %s2089_s25  ;;  %v2778_v4 = vsel %vm219_vm2, %v2744_v57, %v946_v48 }
 0x2c3   : > { %963 = vrot.lane.b32.xlu0 %v2751_v35, %s2085_s23 }
 0x2c6   : > { %965 = vrot.lane.b32.xlu1 %v2744_v57, %s2085_s23 }
 0x2c7   : > { %1231 = vperm.xlu0 %1891, %v2702_v42  }
 0x2ca   : > { %957 = vrot.lane.b32.xlu1 %v2751_v35, %s2089_s25 }
 0x2cb   : > { %1894 = vset.pattern.permute.xlu0 %v3114_v54 }
 0x2cc   : > { %1279 = vperm.xlu0 %1894, %v2702_v42  }
 0x2cd   : > { %v1008_v50 = vpop.permute.xlu1 %1007  ;;  %v1024_v20 = vpop.permute.xlu0 %1023 }
 0x2ce   : > { %1215 = vperm.xlu1 %1890, %v2702_v42  }
 0x2d0   : > { %1897 = vset.pattern.permute.xlu0 %v3115_v33 }
 0x2d1   : > { %1327 = vperm.xlu0 %1897, %v2702_v42  }
 0x2d2   : > { %1892 = vset.pattern.permute.xlu1 %v3116_v60  ;;  %v1056_v56 = vpop.permute.xlu1 %1055  ;;  %v1040_v23 = vpop.permute.xlu0 %1039 }
 0x2d3   : > { %1247 = vperm.xlu1 %1892, %v2702_v42  }
 0x2d5   : > { %1900 = vset.pattern.permute.xlu0 %v3117_v37 }
 0x2d6   : > { %1375 = vperm.xlu0 %1900, %v2702_v42  }
 0x2d7   : > { %1893 = vset.pattern.permute.xlu1 %v3118_v30  ;;  %v1072_v63 = vpop.permute.xlu1 %1071  ;;  %v1088_v21 = vpop.permute.xlu0 %1087 }
 0x2d8   : > { %1263 = vperm.xlu1 %1893, %v2702_v42  }
 0x2da   : > { %991 = vrot.lane.b32.xlu0 %v2778_v4, %s2089_s25 }
 0x2db   : > { %1903 = vset.pattern.permute.xlu0 %v3119_v43 }
 0x2dc   : > { %1895 = vset.pattern.permute.xlu1 %v3120_v61  ;;  %v2814_v62 = vpop.permute.xlu1 %1103  ;;  %v2830_v1 = vpop.permute.xlu0 %1135 }
 0x2dd   : > { %1295 = vperm.xlu1 %1895, %v2702_v42  }
 0x2de   : > { %997 = vrot.lane.b32.xlu0 %v2778_v4, %s2085_s23 }
 0x2e1   : > { %1896 = vset.pattern.permute.xlu1 %v3121_v0  ;;  %v2818_v36 = vpop.permute.xlu1 %1119  ;;  %v2834_v26 = vpop.permute.xlu0 %1183 }
 0x2e2   : > { %1311 = vperm.xlu1 %1896, %v2702_v42   ;;  %1423 = vperm.xlu0 %1903, %v2702_v42  }
 0x2e5   : > { %v2836_v45 = vpop.permute.xlu0 %975 }
 0x2e6   : > { %1898 = vset.pattern.permute.xlu1 %v3122_v41  ;;  %1906 = vset.pattern.permute.xlu0 %v3123_v38  ;;  %v2822_v28 = vpop.permute.xlu1 %1151 }
 0x2e7   : > { %1343 = vperm.xlu1 %1898, %v2702_v42   ;;  %1471 = vperm.xlu0 %1906, %v2702_v42  }
 0x2e9   : > { %v982_v5 = vpop.permute.xlu0 %981 }
 0x2eb   : > { %1899 = vset.pattern.permute.xlu1 %v3124_v31  ;;  %1909 = vset.pattern.permute.xlu0 %v3125_v47  ;;  %v2826_v25 = vpop.permute.xlu1 %1167 }
 0x2ec   : > { %1359 = vperm.xlu1 %1899, %v2702_v42   ;;  %1519 = vperm.xlu0 %1909, %v2702_v42  }
 0x2f0   : > { %1901 = vset.pattern.permute.xlu1 %v3126_v24  ;;  %1912 = vset.pattern.permute.xlu0 %v3127_v22  ;;  %v2828_v59 = vpop.permute.xlu1 %1199 }
 0x2f1   : > { %1391 = vperm.xlu1 %1901, %v2702_v42   ;;  %1567 = vperm.xlu0 %1912, %v2702_v42  }
 0x2f4   : > { %v2832_v49 = vpop.permute.xlu1 %973 }
 0x2f5   : > { %989 = vrot.lane.b32.xlu1 %v2740_v16, %s2089_s25 }
 0x2f6   : > { %1902 = vset.pattern.permute.xlu1 %v3128_v27 }
 0x2f8   : > { %v980_v34 = vpop.permute.xlu1 %979 }
 0x2f9   : > { %995 = vrot.lane.b32.xlu1 %v2740_v16, %s2085_s23 }
 0x2fd   : > { %1407 = vperm.xlu1 %1902, %v2702_v42  }
 0x301   : > { %1904 = vset.pattern.permute.xlu1 %v3129_v3  ;;  %v1077_v3 = vrot.slane %v2751_v35, %v2443_v44 }
 0x302   : > { %1439 = vperm.xlu1 %1904, %v2702_v42  }
 0x306   : > { %1905 = vset.pattern.permute.xlu1 %v3130_v52  ;;  %v1081_v52 = vrot.slane %v2744_v57, %v2443_v44 }
 0x307   : > { %1455 = vperm.xlu1 %1905, %v2702_v42  }
 0x30b   : > { %1907 = vset.pattern.permute.xlu1 %v3131_v2 }
 0x30c   : > { %1487 = vperm.xlu1 %1907, %v2702_v42  }
 0x310   : > { %1908 = vset.pattern.permute.xlu1 %v3132_v58 }
 0x311   : > { %1503 = vperm.xlu1 %1908, %v2702_v42  }
 0x315   : > { %1910 = vset.pattern.permute.xlu1 %v3133_v40 }
 0x316   : > { %1535 = vperm.xlu1 %1910, %v2702_v42  }
 0x31a   : > { %1911 = vset.pattern.permute.xlu1 %v3134_v46 }
 0x31b   : > { %1551 = vperm.xlu1 %1911, %v2702_v42  }
 0x334   : > { %v960_v29 = vpop.permute.xlu1 %959 }
 0x335   : > { %v964_v7 = vpop.permute.xlu0 %963 }
 0x338   : > { %v966_v6 = vpop.permute.xlu1 %965 }
 0x339   : > { %v967_v8 = vsel %vm259_vm6, %v964_v7, %v966_v6  ;;  %v968_v9 = vsel %vm259_vm6, %v966_v6, %v964_v7  ;;  %v1082_v6 = vmul.f32 %v1077_v3, %v1072_v63  ;;  %v1083_v7 = vmul.f32 %v1081_v52, %v1072_v63 }
 0x33c   : > { %v958_v42 = vpop.permute.xlu1 %957 }
 0x33d   : > { %v961_v10 = vsel %vm252_vm4, %v958_v42, %v960_v29  ;;  %v962_v11 = vsel %vm252_vm4, %v960_v29, %v958_v42  ;;  %v1093_v29 = vrot.slane %v2751_v35, %v2446_v55 }
 0x33e   : > { %v969_v13 = vsel %vm2453_vm5, %v961_v10, %v968_v9  ;;  %v970_v17 = vsel %vm2448_vm3, %v962_v11, %v967_v8 }
 0x33f   : > { %v1013_v54 = vrot.slane %v969_v13, %v2443_v44  ;;  %v1017_v33 = vrot.slane %v970_v17, %v2443_v44  ;;  %v1029_v60 = vrot.slane %v969_v13, %v2446_v55  ;;  %v1033_v37 = vrot.slane %v970_v17, %v2446_v55 }
 0x340   : > { %v1045_v30 = vrot.slane %v969_v13, %v2467_v53  ;;  %v1049_v48 = vrot.slane %v970_v17, %v2467_v53  ;;  %v1061_v43 = vrot.slane %v969_v13, %v2470_v32  ;;  %v1065_v61 = vrot.slane %v970_v17, %v2470_v32 }
 0x341   : > { %v1018_v0 = vmul.f32 %v1013_v54, %v1008_v50  ;;  %v1019_v41 = vmul.f32 %v1017_v33, %v1008_v50  ;;  %v1034_v38 = vmul.f32 %v1029_v60, %v1024_v20  ;;  %v1035_v31 = vmul.f32 %v1033_v37, %v1024_v20 }
 0x342   : > { %v1050_v22 = vmul.f32 %v1045_v30, %v1040_v23  ;;  %v1051_v27 = vmul.f32 %v1049_v48, %v1040_v23  ;;  %v1066_v40 = vmul.f32 %v1061_v43, %v1056_v56  ;;  %v1067_v46 = vmul.f32 %v1065_v61, %v1056_v56 }
 0x343   : > { %v1036_v47 = vadd.f32 %v1034_v38, %v1018_v0  ;;  %v1037_v24 = vadd.f32 %v1035_v31, %v1019_v41  ;;  %v1097_v50 = vrot.slane %v2744_v57, %v2446_v55  ;;  %v1109_v20 = vrot.slane %v2751_v35, %v2467_v53 }
 0x344   : > { %v1113_v23 = vrot.slane %v2744_v57, %v2467_v53  ;;  %v1125_v17 = vrot.slane %v2751_v35, %v2470_v32  ;;  %v1129_v56 = vrot.slane %v2744_v57, %v2470_v32  ;;  %v971_v54 = vsel %vm2490_vm8, %v968_v9, %v961_v10 }
 0x345   : > { %v1052_v2 = vadd.f32 %v1050_v22, %v1036_v47  ;;  %v1053_v58 = vadd.f32 %v1051_v27, %v1037_v24  ;;  %v972_v33 = vsel %vm2486_vm7, %v967_v8, %v962_v11  ;;  %v1098_v60 = vmul.f32 %v1093_v29, %v1088_v21 }
 0x346   : > { %v1099_v37 = vmul.f32 %v1097_v50, %v1088_v21  ;;  %v1114_v63 = vmul.f32 %v1109_v20, %v2814_v62  ;;  %v1115_v61 = vmul.f32 %v1113_v23, %v2814_v62  ;;  %v2882_v35 = vsel %vm259_vm6, %v980_v34, %v982_v5 }
 0x347   : > { %v1068_v42 = vadd.f32 %v1066_v40, %v1052_v2  ;;  %v1069_v13 = vadd.f32 %v1067_v46, %v1053_v58  ;;  %v2886_v57 = vsel %vm259_vm6, %v982_v5, %v980_v34  ;;  %v1141_v8 = vrot.slane %v971_v54, %v2443_v44 }
 0x348   : > { %v1145_v21 = vrot.slane %v972_v33, %v2443_v44  ;;  %v1130_v11 = vmul.f32 %v1125_v17, %v2818_v36  ;;  %v1131_v0 = vmul.f32 %v1129_v56, %v2818_v36  ;;  %v1157_v62 = vrot.slane %v971_v54, %v2446_v55 }
 0x349   : > { %v1084_v30 = vadd.f32 %v1082_v6, %v1068_v42  ;;  %v1085_v48 = vadd.f32 %v1083_v7, %v1069_v13  ;;  %v1216_v43 = vpop.permute.xlu1 %1215  ;;  %v1161_v41 = vrot.slane %v972_v33, %v2446_v55  ;;  %v2898_v34 = vsel %vm252_vm4, %v2832_v49, %v2836_v45 }
 0x34a   : > { %v2904_v5 = vsel %vm252_vm4, %v2836_v45, %v2832_v49  ;;  %v985_v36 = vsel %vm2453_vm5, %v2898_v34, %v2886_v57  ;;  %v1173_v24 = vrot.slane %v971_v54, %v2467_v53  ;;  %v1177_v22 = vrot.slane %v972_v33, %v2467_v53 }
 0x34b   : > { %v1100_v9 = vadd.f32 %v1098_v60, %v1084_v30  ;;  %v1101_v10 = vadd.f32 %v1099_v37, %v1085_v48  ;;  %v986_v47 = vsel %vm2448_vm3, %v2904_v5, %v2882_v35  ;;  %v1146_v45 = vmul.f32 %v1141_v8, %v2830_v1 }
 0x34c   : > { %v1147_v52 = vmul.f32 %v1145_v21, %v2830_v1  ;;  %v1162_v2 = vmul.f32 %v1157_v62, %v2822_v28  ;;  %v1163_v58 = vmul.f32 %v1161_v41, %v2822_v28  ;;  %v1189_v29 = vrot.slane %v971_v54, %v2470_v32  ;;  %v1232_v54 = vpop.permute.xlu0 %1231 }
 0x34d   : > { %v1116_v38 = vadd.f32 %v1114_v63, %v1100_v9  ;;  %v1117_v31 = vadd.f32 %v1115_v61, %v1101_v10  ;;  %v1193_v50 = vrot.slane %v972_v33, %v2470_v32  ;;  %v1205_v20 = vrot.slane %v985_v36, %v2443_v44 }
 0x34e   : > { %v1248_v27 = vpop.permute.xlu1 %1247  ;;  %v1209_v23 = vrot.slane %v986_v47, %v2443_v44  ;;  %v1178_v6 = vmul.f32 %v1173_v24, %v2826_v25  ;;  %v1179_v7 = vmul.f32 %v1177_v22, %v2826_v25  ;;  %v1194_v28 = vmul.f32 %v1189_v29, %v2834_v26 }
 0x34f   : > { %v1132_v3 = vadd.f32 %v1130_v11, %v1116_v38  ;;  %v1133_v49 = vadd.f32 %v1131_v0, %v1117_v31  ;;  %v1195_v60 = vmul.f32 %v1193_v50, %v2834_v26  ;;  %v1221_v33 = vrot.slane %v985_v36, %v2446_v55 }
 0x350   : > { %v1225_v37 = vrot.slane %v986_v47, %v2446_v55  ;;  %v1210_v63 = vmul.f32 %v1205_v20, %v2828_v59  ;;  %v1211_v25 = vmul.f32 %v1209_v23, %v2828_v59  ;;  %v1237_v61 = vrot.slane %v985_v36, %v2467_v53  ;;  %v1280_v22 = vpop.permute.xlu0 %1279 }
 0x351   : > { %v1148_v40 = vadd.f32 %v1146_v45, %v1132_v3  ;;  %v1149_v46 = vadd.f32 %v1147_v52, %v1133_v49  ;;  %v1241_v9 = vrot.slane %v986_v47, %v2467_v53  ;;  %v1226_v11 = vmul.f32 %v1221_v33, %v1216_v43 }
 0x352   : > { %v1227_v26 = vmul.f32 %v1225_v37, %v1216_v43  ;;  %v1253_v0 = vrot.slane %v985_v36, %v2470_v32  ;;  %v1257_v62 = vrot.slane %v986_v47, %v2470_v32  ;;  %v1242_v41 = vmul.f32 %v1237_v61, %v1232_v54 }
 0x353   : > { %v1164_v42 = vadd.f32 %v1162_v2, %v1148_v40  ;;  %v1165_v1 = vadd.f32 %v1163_v58, %v1149_v46  ;;  %v1264_v13 = vpop.permute.xlu1 %1263  ;;  %v1243_v38 = vmul.f32 %v1241_v9, %v1232_v54  ;;  %v1273_v59 = vrot.slane %v2692_v15, %v2443_v44 }
 0x354   : > { %v1269_v3 = vrot.slane %v2690_v39, %v2443_v44  ;;  %v1258_v52 = vmul.f32 %v1253_v0, %v1248_v27  ;;  %v1259_v2 = vmul.f32 %v1257_v62, %v1248_v27  ;;  %v1289_v36 = vrot.slane %v2692_v15, %v2446_v55 }
 0x355   : > { %v1180_v17 = vadd.f32 %v1178_v6, %v1164_v42  ;;  %v1181_v56 = vadd.f32 %v1179_v7, %v1165_v1  ;;  %v1285_v47 = vrot.slane %v2690_v39, %v2446_v55  ;;  %v1275_v29 = vmul.f32 %v1273_v59, %v1264_v13  ;;  %v1328_v42 = vpop.permute.xlu0 %1327 }
 0x356   : > { %v1274_v46 = vmul.f32 %v1269_v3, %v1264_v13  ;;  %v1305_v50 = vrot.slane %v2692_v15, %v2467_v53  ;;  %v1301_v20 = vrot.slane %v2690_v39, %v2467_v53  ;;  %v1291_v6 = vmul.f32 %v1289_v36, %v1280_v22 }
 0x357   : > { %v1196_v30 = vadd.f32 %v1194_v28, %v1180_v17  ;;  %v1197_v48 = vadd.f32 %v1195_v60, %v1181_v56  ;;  %v1290_v23 = vmul.f32 %v1285_v47, %v1280_v22  ;;  %v1321_v1 = vrot.slane %v2692_v15, %v2470_v32 }
 0x358   : > { %v1296_v10 = vpop.permute.xlu1 %1295  ;;  %v1317_v17 = vrot.slane %v2690_v39, %v2470_v32  ;;  %v987_v33 = vsel %vm2490_vm8, %v2886_v57, %v2898_v34  ;;  %v988_v37 = vsel %vm2486_vm7, %v2882_v35, %v2904_v5 }
 0x359   : > { %v1212_v8 = vadd.f32 %v1210_v63, %v1196_v30  ;;  %v1213_v21 = vadd.f32 %v1211_v25, %v1197_v48  ;;  %v1306_v60 = vmul.f32 %v1301_v20, %v1296_v10  ;;  %v1307_v54 = vmul.f32 %v1305_v50, %v1296_v10 }
 0x35a   : > { %v1333_v9 = vrot.slane %v987_v33, %v2443_v44  ;;  %v1337_v10 = vrot.slane %v988_v37, %v2443_v44  ;;  %v1353_v35 = vrot.slane %v988_v37, %v2446_v55  ;;  %v1369_v22 = vrot.slane %v988_v37, %v2467_v53 }
 0x35b   : > { %v1228_v31 = vadd.f32 %v1226_v11, %v1212_v8  ;;  %v1229_v24 = vadd.f32 %v1227_v26, %v1213_v21  ;;  %v1376_v8 = vpop.permute.xlu0 %1375  ;;  %v1349_v26 = vrot.slane %v987_v33, %v2446_v55 }
 0x35c   : > { %v1338_v21 = vmul.f32 %v1333_v9, %v1328_v42  ;;  %v1339_v11 = vmul.f32 %v1337_v10, %v1328_v42 }
 0x35d   : > { %v1244_v49 = vadd.f32 %v1242_v41, %v1228_v31  ;;  %v1245_v45 = vadd.f32 %v1243_v38, %v1229_v24  ;;  %v1312_v43 = vpop.permute.xlu1 %1311  ;;  %v1365_v24 = vrot.slane %v987_v33, %v2467_v53 }
 0x35e   : > { %v1322_v48 = vmul.f32 %v1317_v17, %v1312_v43  ;;  %v1323_v63 = vmul.f32 %v1321_v1, %v1312_v43 }
 0x35f   : > { %v1260_v58 = vadd.f32 %v1258_v52, %v1244_v49  ;;  %v1261_v40 = vadd.f32 %v1259_v2, %v1245_v45  ;;  %v992_v0 = vpop.permute.xlu0 %991  ;;  %v1381_v45 = vrot.slane %v987_v33, %v2470_v32  ;;  %v1385_v52 = vrot.slane %v988_v37, %v2470_v32 }
 0x361   : > { %v1276_v27 = vadd.f32 %v1274_v46, %v1260_v58  ;;  %v1277_v7 = vadd.f32 %v1275_v29, %v1261_v40 }
 0x362   : > { %v1344_v56 = vpop.permute.xlu1 %1343 }
 0x363   : > { %v1292_v28 = vadd.f32 %v1290_v23, %v1276_v27  ;;  %v1293_v13 = vadd.f32 %v1291_v6, %v1277_v7  ;;  %v1354_v62 = vmul.f32 %v1349_v26, %v1344_v56  ;;  %v1355_v41 = vmul.f32 %v1353_v35, %v1344_v56  ;;  %v998_v2 = vpop.permute.xlu0 %997 }
 0x364   : > { %v1386_v23 = vmul.f32 %v1381_v45, %v1376_v8  ;;  %v1387_v6 = vmul.f32 %v1385_v52, %v1376_v8  ;;  %v1477_v26 = vrot.slane %v2740_v16, %v2446_v55  ;;  %v1481_v35 = vrot.slane %v2778_v4, %v2446_v55 }
 0x365   : > { %v1308_v30 = vadd.f32 %v1306_v60, %v1292_v28  ;;  %v1309_v15 = vadd.f32 %v1307_v54, %v1293_v13  ;;  %v1497_v45 = vrot.slane %v2778_v4, %v2467_v53 }
 0x367   : > { %v1324_v39 = vadd.f32 %v1322_v48, %v1308_v30  ;;  %v1325_v25 = vadd.f32 %v1323_v63, %v1309_v15  ;;  %v1360_v61 = vpop.permute.xlu1 %1359  ;;  %v1424_v60 = vpop.permute.xlu0 %1423 }
 0x368   : > { %v1370_v3 = vmul.f32 %v1365_v24, %v1360_v61  ;;  %v1371_v49 = vmul.f32 %v1369_v22, %v1360_v61 }
 0x369   : > { %v1340_v57 = vadd.f32 %v1338_v21, %v1324_v39  ;;  %v1341_v34 = vadd.f32 %v1339_v11, %v1325_v25 }
 0x36b   : > { %v1356_v38 = vadd.f32 %v1354_v62, %v1340_v57  ;;  %v1357_v31 = vadd.f32 %v1355_v41, %v1341_v34  ;;  %v1461_v57 = vrot.slane %v2740_v16, %v2443_v44  ;;  %v1465_v34 = vrot.slane %v2778_v4, %v2443_v44 }
 0x36c   : > { %v1392_v5 = vpop.permute.xlu1 %1391 }
 0x36d   : > { %v1372_v43 = vadd.f32 %v1370_v3, %v1356_v38  ;;  %v1373_v36 = vadd.f32 %v1371_v49, %v1357_v31  ;;  %v1493_v49 = vrot.slane %v2740_v16, %v2467_v53 }
 0x36f   : > { %v1388_v18 = vadd.f32 %v1386_v23, %v1372_v43  ;;  %v1389_v28 = vadd.f32 %v1387_v6, %v1373_v36 }
 0x370   : > { %v990_v59 = vpop.permute.xlu1 %989 }
 0x371   : > { %v993_v58 = vsel %vm252_vm4, %v990_v59, %v992_v0  ;;  %v994_v40 = vsel %vm252_vm4, %v992_v0, %v990_v59 }
 0x374   : > { %v996_v47 = vpop.permute.xlu1 %995 }
 0x375   : > { %v999_v46 = vsel %vm259_vm6, %v996_v47, %v998_v2  ;;  %v1000_v29 = vsel %vm259_vm6, %v998_v2, %v996_v47 }
 0x376   : > { %v1001_v50 = vsel %vm2453_vm5, %v993_v58, %v1000_v29  ;;  %v1002_v20 = vsel %vm2448_vm3, %v994_v40, %v999_v46 }
 0x377   : > { %v1397_v27 = vrot.slane %v1001_v50, %v2443_v44  ;;  %v1401_v7 = vrot.slane %v1002_v20, %v2443_v44  ;;  %v1429_v42 = vrot.slane %v1001_v50, %v2467_v53  ;;  %v1433_v1 = vrot.slane %v1002_v20, %v2467_v53 }
 0x378   : > { %v1408_v17 = vpop.permute.xlu1 %1407  ;;  %v1413_v19 = vrot.slane %v1001_v50, %v2446_v55  ;;  %v1417_v56 = vrot.slane %v1002_v20, %v2446_v55  ;;  %v1445_v61 = vrot.slane %v1001_v50, %v2470_v32  ;;  %v1449_v9 = vrot.slane %v1002_v20, %v2470_v32 }
 0x379   : > { %v1402_v13 = vmul.f32 %v1397_v27, %v1392_v5  ;;  %v1403_v51 = vmul.f32 %v1401_v7, %v1392_v5  ;;  %v1434_v15 = vmul.f32 %v1429_v42, %v1424_v60  ;;  %v1435_v48 = vmul.f32 %v1433_v1, %v1424_v60  ;;  %v1472_v5 = vpop.permute.xlu0 %1471 }
 0x37a   : > { %v1418_v37 = vmul.f32 %v1413_v19, %v1408_v17  ;;  %v1419_v30 = vmul.f32 %v1417_v56, %v1408_v17  ;;  %v1482_v24 = vmul.f32 %v1477_v26, %v1472_v5  ;;  %v1483_v22 = vmul.f32 %v1481_v35, %v1472_v5 }
 0x37b   : > { %v1404_v54 = vadd.f32 %v1402_v13, %v1388_v18  ;;  %v1405_v33 = vadd.f32 %v1403_v51, %v1389_v28  ;;  %v1003_v50 = vsel %vm2490_vm8, %v1000_v29, %v993_v58  ;;  %v1004_v20 = vsel %vm2486_vm7, %v999_v46, %v994_v40 }
 0x37c   : > { %v1509_v27 = vrot.slane %v2740_v16, %v2470_v32  ;;  %v1513_v7 = vrot.slane %v2778_v4, %v2470_v32  ;;  %v1525_v1 = vrot.slane %v1003_v50, %v2443_v44  ;;  %v1529_v17 = vrot.slane %v1004_v20, %v2443_v44 }
 0x37d   : > { %v1420_v63 = vadd.f32 %v1418_v37, %v1404_v54  ;;  %v1421_v39 = vadd.f32 %v1419_v30, %v1405_v33  ;;  %v1440_v25 = vpop.permute.xlu1 %1439  ;;  %v1520_v29 = vpop.permute.xlu0 %1519  ;;  %v1541_v18 = vrot.slane %v1003_v50, %v2446_v55  ;;  %v1545_v16 = vrot.slane %v1004_v20, %v2446_v55 }
 0x37e   : > { %v1450_v21 = vmul.f32 %v1445_v61, %v1440_v25  ;;  %v1451_v11 = vmul.f32 %v1449_v9, %v1440_v25  ;;  %v1530_v14 = vmul.f32 %v1525_v1, %v1520_v29  ;;  %v1531_v40 = vmul.f32 %v1529_v17, %v1520_v29 }
 0x37f   : > { %v1436_v10 = vadd.f32 %v1434_v15, %v1420_v63  ;;  %v1437_v8 = vadd.f32 %v1435_v48, %v1421_v39  ;;  %v1573_v60 = vrot.slane %v1003_v50, %v2470_v32  ;;  %v1577_v44 = vrot.slane %v1004_v20, %v2470_v32 }
 0x380   : > { %v1557_v54 = vrot.slane %v1003_v50, %v2467_v53  ;;  %v1561_v33 = vrot.slane %v1004_v20, %v2467_v53 }
 0x381   : > { %v1452_v62 = vadd.f32 %v1450_v21, %v1436_v10  ;;  %v1453_v41 = vadd.f32 %v1451_v11, %v1437_v8  ;;  %v1568_v37 = vpop.permute.xlu0 %1567 }
 0x382   : > { %v1456_v0 = vpop.permute.xlu1 %1455  ;;  %v1578_v25 = vmul.f32 %v1573_v60, %v1568_v37  ;;  %v1579_v55 = vmul.f32 %v1577_v44, %v1568_v37 }
 0x383   : > { %v1466_v38 = vmul.f32 %v1461_v57, %v1456_v0  ;;  %v1467_v31 = vmul.f32 %v1465_v34, %v1456_v0 }
 0x385   : > { %v1468_v59 = vadd.f32 %v1466_v38, %v1452_v62  ;;  %v1469_v3 = vadd.f32 %v1467_v31, %v1453_v41 }
 0x387   : > { %v1488_v52 = vpop.permute.xlu1 %1487  ;;  %v1484_v2 = vadd.f32 %v1482_v24, %v1468_v59  ;;  %v1485_v43 = vadd.f32 %v1483_v22, %v1469_v3 }
 0x388   : > { %v1498_v36 = vmul.f32 %v1493_v49, %v1488_v52  ;;  %v1499_v47 = vmul.f32 %v1497_v45, %v1488_v52 }
 0x38a   : > { %v1500_v23 = vadd.f32 %v1498_v36, %v1484_v2  ;;  %v1501_v6 = vadd.f32 %v1499_v47, %v1485_v43  ;;  %v1918_v2 = vld [vmem:[%s2257_s30] sm:$0xff] }
 0x38c   : > { %v1504_v42 = vpop.permute.xlu1 %1503 }
 0x38d   : > { %v1514_v19 = vmul.f32 %v1509_v27, %v1504_v42  ;;  %v1515_v56 = vmul.f32 %v1513_v7, %v1504_v42 }
 0x38f   : > { %v1516_v12 = vadd.f32 %v1514_v19, %v1500_v23  ;;  %v1517_v58 = vadd.f32 %v1515_v56, %v1501_v6 }
 0x391   : > { %v1536_v46 = vpop.permute.xlu1 %1535  ;;  %v1532_v28 = vadd.f32 %v1530_v14, %v1516_v12  ;;  %v1533_v13 = vadd.f32 %v1531_v40, %v1517_v58 }
 0x392   : > { %v1546_v4 = vmul.f32 %v1541_v18, %v1536_v46  ;;  %v1547_v51 = vmul.f32 %v1545_v16, %v1536_v46 }
 0x394   : > { %v1548_v15 = vadd.f32 %v1546_v4, %v1532_v28  ;;  %v1549_v48 = vadd.f32 %v1547_v51, %v1533_v13 }
 0x396   : > { %v1552_v30 = vpop.permute.xlu1 %1551 }
 0x397   : > { %v1562_v63 = vmul.f32 %v1557_v54, %v1552_v30  ;;  %v1563_v39 = vmul.f32 %v1561_v33, %v1552_v30 }
 0x399   : > { %v1564_v61 = vadd.f32 %v1562_v63, %v1548_v15  ;;  %v1565_v9 = vadd.f32 %v1563_v39, %v1549_v48 }
 0x39b   : > { %v1580_v10 = vadd.f32 %v1578_v25, %v1564_v61  ;;  %v1581_v8 = vadd.f32 %v1579_v55, %v1565_v9 }
 0x39d   : > { %v1582_v21 = vsel %vm915_vm9, %v1580_v10, 0.0  ;;  %v1583_v32 = vsel %vm915_vm9, %v1581_v8, 0.0  ;;  %v1588_v11 = vmul.f32 %v1580_v10, %v1580_v10  ;;  %v1589_v57 = vmul.f32 %v1581_v8, %v1581_v8 }
 0x39e   : > { %v1584_v34 = vadd.f32 %v1583_v32, %v1582_v21 }
 0x39f   : > { %v1590_v53 = vsel %vm915_vm9, %v1588_v11, 0.0  ;;  %v1591_v26 = vsel %vm915_vm9, %v1589_v57, 0.0 }
 0x3a0   : > { %1585 = vadd.xlane.f32.xlu1 %v1584_v34  ;;  %v1592_v35 = vadd.f32 %v1591_v26, %v1590_v53 }
 0x3a2   : > { %1593 = vadd.xlane.f32.xlu0 %v1592_v35 }
 0x429   : > { %v1586_v5 = vpop.xlane.xlu1 %1585 }
 0x42a   : > { %v1587_v0 = vmul.f32 0.00390625, %v1586_v5 }
 0x42b   : > { %v1594_v62 = vpop.xlane.xlu0 %1593 }
 0x42c   : > { %v1595_v41 = vmul.f32 0.00390625, %v1594_v62  ;;  %v1598_v38 = vmul.f32 %v1587_v0, %v1587_v0  ;;  %v1596_v22 = vsub.f32 %v1580_v10, %v1587_v0  ;;  %v1597_v59 = vsub.f32 %v1581_v8, %v1587_v0 }
 0x42e   : > { %v1599_v31 = vsub.f32 %v1595_v41, %v1598_v38 }
 0x430   : > { %v1600_v24 = vadd.f32 1e-05, %v1599_v31 }
 0x432   : > { %1916 = vrsqrt.f32 %v1600_v24 }
 0x43f   : > { %v1917_v3 = vpop.eup %1916 }
 0x440   : > { %v1602_v49 = vmul.f32 %v1917_v3, %v1596_v22  ;;  %v1603_v45 = vmul.f32 %v1917_v3, %v1597_v59 }
 0x442   : > { %v1606_v52 = vcombine.low %v1602_v49, %v1603_v45 }
 0x444   : > { %v1608_v43 = vadd.f32 %v1918_v2, %v1606_v52 }
 0x446   : > { %1609 = vst [vmem:[%s211_s28] sm:$0xff] %v1608_v43 }
 0x447   : > { %2012 = shalt.err (!%p2009_p12)
}
 0x448   : > { %s2013_s24 = scalar_lea.hbm %s1623_s7, 128  ;;  %s2017_s30 = scalar_lea.hbm %s3061_s3, 256 }
 0x449   : > { %p2014_p3 = scmp.ne.s32.totalorder %s1623_s7, %s2013_s24  ;;  %p2018_p9 = scmp.lt.s32.totalorder %s1623_s7, %s3061_s3 }
 0x44a   : > { %p2019_p11 = scmp.lt.s32.totalorder %s2017_s30, %s2013_s24 }
 0x44b   : > { %p2015_p7 = pnand %p2014_p3, %p3135_p0 }
 0x44c   : > { %p2020_p5 = por %p2019_p11, %p2018_p9 }
 0x44d   : > { %p2016_p10 = pneg %p2015_p7 }
 0x44f   : > { %p2021_p13 = pnand %p2020_p5, %p2016_p10 }
 0x451   : > { %2024 = shalt.err (!%p2021_p13)
}
 0x452   : > { %1744 = dma.vmem_to_hbm [thread:$0]  (%p3135_p0), %s1626_s4, 128, %s1623_s7, %s1611_s11  }
 0x453 PF: > { %s1637_s23 = sand.u32 1, %s2055_s12   ;;  %p3136_p1 = scmp.ne.s32.totalorder %s3092_s19, 0 }
 0x454   : > { %p3137_p2 = scmp.ge.s32.totalorder %s2067_s15, 2  ;;  %s1638_s25 = scalar_lea.sflag [#allocation4], %s1637_s23 }
 0x456   : > { %p1758_p4 = pnand %p3137_p2, %p3136_p1 }
 0x458   : > { %p1759_p6 = pneg %p1758_p4 }
 0x45a   : > { %2050 = dma.done.wait (%p1759_p6), %s1638_s25, 128  }
 0x45b   : > { %2052 = vsyncadd (%p1759_p6), %s1638_s25, 4294967168  ;;  %p17_p8 = scmp.ge.s32.totalorder %s2187_s26, 4   ;;  %s3138_s12 = smov %s2059_s13 }
 0x45c   : > { %s3139_s13 = smov %s2063_s14  ;;  %s3140_s14 = smov %s2214_s8 }
 0x45d   : > { %s3141_s15 = smov %s2187_s26  ;;  %19 = sbr.rel (!%p17_p8) target bundleno = 6 (0x6), region = 85 }
 0x462   :  { %1643 = vsyncpa [#allocation3], 1 }
 0x463   :  { %1645 = vsyncpa [#allocation3 + $0x1], 1 }
 0x464   :  { %1646 = vsyncpa [#allocation6], 1 }
 0x465   :  { %1647 = vsyncpa [#allocation4], 1 }
 0x466   :  { %1649 = vsyncpa [#allocation4 + $0x1], 1 }

</bundles_post_ra>
